<compile_context>
chip_gen: v5e
topology: v5e:2x2
jax: 0.10.0
libtpu: 0.0.40
codegen_flags: <defaults>
</compile_context>

<pallas_src>
import jax
import jax.numpy as jnp
from jax import lax
from jax.experimental import pallas as pl
from jax.experimental.pallas import tpu as pltpu


def time_mixing_kernel(x_ref, u_ref, w_ref, mk_ref, mv_ref, mr_ref,
                       wk_ref, wv_ref, wr_ref, wo_ref, bo_ref,
                       o_ref,
                       k_s, v_s):
    Bblk, T, d = x_ref.shape
    M = T * Bblk

    # ---- time-major relayout + time-shift mix ------------------------------
    # Row r = t*Bblk + b holds x[b, t]; one sublane transpose up front (free
    # when Bblk == 1) lets the projections write straight into the (T, Bblk, d)
    # recurrence layout with a plain reshape.
    xt = jnp.swapaxes(x_ref[...], 0, 1)            # (T, Bblk, d)
    x2 = xt.reshape(M, d)

    # x_shifted[b, t] = x[b, t-1]; zero at t == 0 (ZeroPad2d((0,0,1,-1))).
    rolled = pltpu.roll(x2, shift=Bblk, axis=0)    # row r <- row r - Bblk
    row = lax.broadcasted_iota(jnp.int32, (M, 1), 0)
    xs2 = jnp.where(row < Bblk, 0.0, rolled)       # rows with t == 0 -> 0

    mk = mk_ref[...]                               # (1, d), broadcast over rows
    mv = mv_ref[...]
    mr = mr_ref[...]

    key_in = x2 * mk + xs2 * (1.0 - mk)
    val_in = x2 * mv + xs2 * (1.0 - mv)
    rec_in = jax.nn.sigmoid(x2 * mr + xs2 * (1.0 - mr))

    # ---- projections: M = T*Bblk rows per matmul ---------------------------
    # At large d, fold mk/mv into (d, 2d) concatenated weights or split the
    # MXU phase into its own pallas_call; kept mix-then-matmul here to keep
    # exact 1e-5 parity with the reference at f32.
    k_s[...] = jnp.dot(key_in, wk_ref[...],
                       preferred_element_type=jnp.float32).reshape(T, Bblk, d)
    v_s[...] = jnp.dot(val_in, wv_ref[...],
                       preferred_element_type=jnp.float32).reshape(T, Bblk, d)
    r = jnp.dot(rec_in, wr_ref[...], preferred_element_type=jnp.float32)

    # ---- sequential WKV recurrence -----------------------------------------
    # Carries live in vregs; per-step VMEM traffic is one dense (Bblk, d)
    # load/store per operand.  Broadcasts hoisted out of the (unrolled) loop.
    u_b = pl.broadcast_to(u_ref[...], (Bblk, d))
    w_b = pl.broadcast_to(w_ref[...], (Bblk, d))
    neg_w_b = pl.broadcast_to(-w_ref[...], (Bblk, d))

    def body(i, carry):
        a, b = carry                               # (Bblk, d) each
        kt = k_s[i]                                # dense (Bblk, d) tile
        vt = v_s[i]
        uk = u_b + kt                              # shared by q and e2
        q = jnp.maximum(uk, w_b)
        e1 = jnp.exp(neg_w_b - q)
        e2 = jnp.exp(uk - q)
        a = e1 * a + e2 * vt
        b = e1 * b + e2
        # k_t/v_t already consumed above: reuse the scratch as a/b history
        # (divide deferred to the epilogue).
        k_s[i] = a
        v_s[i] = b
        return a, b

    zero = jnp.zeros((Bblk, d), jnp.float32)
    unroll = True if T <= 32 else 8                # LLO visibility across exp latency
    lax.fori_loop(0, T, body, (zero, zero), unroll=unroll)

    # ---- epilogue: one vectorized divide + output projection ---------------
    wkv = k_s[...] / v_s[...]                      # exact divide keeps 1e-5 parity
    mixed = wkv.reshape(M, d) * r
    out2 = jnp.dot(mixed, wo_ref[...],
                   preferred_element_type=jnp.float32) + bo_ref[...]
    o_ref[...] = jnp.swapaxes(out2.reshape(T, Bblk, d), 0, 1)


def time_mixing(x, params, *, max_batch_block=8):
    B, T, d = x.shape
    u, w, mk, mv, mr, Wk, Wv, Wr, Wo, bo = params

    # Batch-block size: largest divisor of B (capped) that still leaves >= 2
    # grid steps, so the "parallel" axis can engage both v7x TensorCores;
    # fall back to the largest divisor when B == 1.
    divisors = [bb for bb in range(1, min(B, max_batch_block) + 1) if B % bb == 0]
    multi_step = [bb for bb in divisors if B // bb >= 2]
    Bblk = max(multi_step) if multi_step else max(divisors)

    vec_spec = pl.BlockSpec((1, d), lambda g: (0, 0))
    mat_spec = pl.BlockSpec((d, d), lambda g: (0, 0))
    blk_spec = pl.BlockSpec((Bblk, T, d), lambda g: (g, 0, 0))

    # ---- VMEM budget --------------------------------------------------------
    # x/out blocks double-buffered by the pipeline; 2 scratch blocks (k/v
    # reused as a/b); ~8 block-sized live f32 temporaries in the body
    # (x2/xs2, key/val/rec inputs, r, wkv, mixed, out2); weights double-
    # buffered; per-channel vectors pad to (8, >=128).
    itemsize = 4
    blk_bytes = Bblk * T * d * itemsize
    vmem_bytes = (2 * 2 * blk_bytes                       # x + out, double-buffered
                  + 2 * blk_bytes                         # k/v (= a/b) scratch
                  + 8 * blk_bytes                         # live matmul/VPU temporaries
                  + 4 * 2 * d * d * itemsize              # Wk/Wv/Wr/Wo, double-buffered
                  + 6 * 2 * 8 * max(d, 128) * itemsize)   # padded per-channel vectors
    # Generation-aware ceiling: ~112 MiB usable on v5e/v6e (128 MiB physical),
    # ~56 MiB on v7x (64 MiB physical).  Never request below the 32 MiB default.
    try:
        vmem_cap = int(pltpu.get_tpu_info().vmem_capacity_bytes)
    except Exception:
        vmem_cap = 64 * 1024 * 1024
    vmem_ceiling = max((vmem_cap * 7) // 8, 32 * 1024 * 1024)
    vmem_limit = int(min(max(32 * 1024 * 1024, 2 * vmem_bytes), vmem_ceiling))

    # NOTE (v7x, large d): weights could additionally be single-buffered
    # (pipeline_mode=pl.Buffered(1)) and cast to bf16 to halve their VMEM
    # residency; kept f32 / default buffering here for exact parity.
    return pl.pallas_call(
        time_mixing_kernel,
        out_shape=jax.ShapeDtypeStruct((B, T, d), jnp.float32),
        grid_spec=pltpu.PrefetchScalarGridSpec(
            num_scalar_prefetch=0,
            grid=(B // Bblk,),
            in_specs=[blk_spec,                               # x
                      vec_spec, vec_spec,                     # u, w
                      vec_spec, vec_spec, vec_spec,           # time-mix k/v/r
                      mat_spec, mat_spec, mat_spec, mat_spec, # Wk, Wv, Wr, Wo
                      vec_spec],                              # ln_out bias
            out_specs=blk_spec,
            scratch_shapes=[pltpu.VMEM((Bblk * 0 + T, Bblk, d), jnp.float32),  # k -> a
                            pltpu.VMEM((T, Bblk, d), jnp.float32)],            # v -> b
        ),
        compiler_params=pltpu.CompilerParams(
            dimension_semantics=("parallel",),   # no cross-batch carry -> megacore OK
            vmem_limit_bytes=vmem_limit),
    )(x, u, w, mk, mv, mr, Wk, Wv, Wr, Wo, bo)


def time_mixing_ref(x, params):
    """Pure-JAX reference (mirrors the PyTorch forward exactly)."""
    u, w, mk, mv, mr, Wk, Wv, Wr, Wo, bo = params
    B, T, d = x.shape
    xs = jnp.concatenate([jnp.zeros((B, 1, d), x.dtype), x[:, :-1, :]], axis=1)
    key = (x * mk + xs * (1.0 - mk)) @ Wk
    val = (x * mv + xs * (1.0 - mv)) @ Wv
    rec = jax.nn.sigmoid(x * mr + xs * (1.0 - mr)) @ Wr

    def step(carry, kv):
        a, b = carry
        kt, vt = kv
        q = jnp.maximum(u + kt, w)
        e1 = jnp.exp(-w - q)
        e2 = jnp.exp(u + kt - q)
        a = e1 * a + e2 * vt
        b = e1 * b + e2
        return (a, b), a / b

    (_, _), wkv = lax.scan(
        step,
        (jnp.zeros((B, d), x.dtype), jnp.zeros((B, d), x.dtype)),
        (jnp.swapaxes(key, 0, 1), jnp.swapaxes(val, 0, 1)))
    wkv = jnp.swapaxes(wkv, 0, 1)
    return (wkv * rec) @ Wo + bo


def make_params(dim, key):
    ks = jax.random.split(key, 8)
    scale = 1.0 / jnp.sqrt(dim)
    # (1, dim) per-channel vectors (torch stores them as (1, 1, dim); math identical)
    u = 0.3 * jax.random.normal(ks[0], (1, dim), jnp.float32)
    w = 0.5 + 0.2 * jax.random.normal(ks[1], (1, dim), jnp.float32)
    mk = jax.nn.sigmoid(jax.random.normal(ks[2], (1, dim), jnp.float32))
    mv = jax.nn.sigmoid(jax.random.normal(ks[3], (1, dim), jnp.float32))
    mr = jax.nn.sigmoid(jax.random.normal(ks[4], (1, dim), jnp.float32))
    # Linear weights stored pre-transposed as (in, out); torch Linear does x @ W.T
    Wk = scale * jax.random.normal(ks[5], (dim, dim), jnp.float32)
    Wv = scale * jax.random.normal(ks[6], (dim, dim), jnp.float32)
    Wr = scale * jax.random.normal(ks[7], (dim, dim), jnp.float32)
    Wo = scale * jax.random.normal(jax.random.fold_in(key, 99), (dim, dim), jnp.float32)
    bo = 0.1 * jax.random.normal(jax.random.fold_in(key, 100), (1, dim), jnp.float32)
    return (u, w, mk, mv, mr, Wk, Wv, Wr, Wo, bo)


if __name__ == "__main__":
    B, T, d = 2, 8, 32
    key = jax.random.PRNGKey(0)
    kx, kp = jax.random.split(key)
    x = jax.random.normal(kx, (B, T, d), jnp.float32)
    params = make_params(d, kp)

    out = jax.block_until_ready(time_mixing(x, params))
    ref = jax.block_until_ready(time_mixing_ref(x, params))

    assert out.shape == (B, T, d)
    err = jnp.max(jnp.abs(out - ref))
    assert jnp.allclose(out, ref, rtol=1e-5, atol=1e-5), f"max abs err {err}"
    print("KERNEL_OK")
</pallas_src>

<mosaic_0001>
module attributes {stable_mosaic.version = 11 : i64} {
  func.func @time_mixing_kernel(%arg0: i32, %arg1: memref<1x8x32xf32, #tpu.memory_space<vmem>>, %arg2: memref<1x32xf32, #tpu.memory_space<vmem>>, %arg3: memref<1x32xf32, #tpu.memory_space<vmem>>, %arg4: memref<1x32xf32, #tpu.memory_space<vmem>>, %arg5: memref<1x32xf32, #tpu.memory_space<vmem>>, %arg6: memref<1x32xf32, #tpu.memory_space<vmem>>, %arg7: memref<32x32xf32, #tpu.memory_space<vmem>>, %arg8: memref<32x32xf32, #tpu.memory_space<vmem>>, %arg9: memref<32x32xf32, #tpu.memory_space<vmem>>, %arg10: memref<32x32xf32, #tpu.memory_space<vmem>>, %arg11: memref<1x32xf32, #tpu.memory_space<vmem>>, %arg12: memref<1x8x32xf32, #tpu.memory_space<vmem>>, %arg13: memref<8x1x32xf32, #tpu.memory_space<vmem>>, %arg14: memref<8x1x32xf32, #tpu.memory_space<vmem>>) attributes {dimension_semantics = [#tpu.dimension_semantics<parallel>], iteration_bounds = array<i64: 2>, scalar_prefetch = 0 : i64, scratch_operands = 2 : i64, tpu.core_type = #tpu.core_type<tc>, window_params = [{transform_indices = @transform_0, window_bounds = array<i64: 1, 8, 32>}, {pipeline_mode = #tpu.pipeline_mode<synchronous>, transform_indices = @transform_1, window_bounds = array<i64: 1, 32>}, {pipeline_mode = #tpu.pipeline_mode<synchronous>, transform_indices = @transform_2, window_bounds = array<i64: 1, 32>}, {pipeline_mode = #tpu.pipeline_mode<synchronous>, transform_indices = @transform_3, window_bounds = array<i64: 1, 32>}, {pipeline_mode = #tpu.pipeline_mode<synchronous>, transform_indices = @transform_4, window_bounds = array<i64: 1, 32>}, {pipeline_mode = #tpu.pipeline_mode<synchronous>, transform_indices = @transform_5, window_bounds = array<i64: 1, 32>}, {pipeline_mode = #tpu.pipeline_mode<synchronous>, transform_indices = @transform_6, window_bounds = array<i64: 32, 32>}, {pipeline_mode = #tpu.pipeline_mode<synchronous>, transform_indices = @transform_7, window_bounds = array<i64: 32, 32>}, {pipeline_mode = #tpu.pipeline_mode<synchronous>, transform_indices = @transform_8, window_bounds = array<i64: 32, 32>}, {pipeline_mode = #tpu.pipeline_mode<synchronous>, transform_indices = @transform_9, window_bounds = array<i64: 32, 32>}, {pipeline_mode = #tpu.pipeline_mode<synchronous>, transform_indices = @transform_10, window_bounds = array<i64: 1, 32>}, {transform_indices = @transform_11, window_bounds = array<i64: 1, 8, 32>}]} {
    %c0 = arith.constant 0 : index
    %c0_0 = arith.constant 0 : index
    %c0_1 = arith.constant 0 : index
    %0 = vector.load %arg1[%c0, %c0_0, %c0_1] : memref<1x8x32xf32, #tpu.memory_space<vmem>>, vector<1x8x32xf32>
    %1 = tpu.transpose %0, [1, 0, 2] : vector<1x8x32xf32> -> vector<8x1x32xf32>
    %2 = vector.shape_cast %1 : vector<8x1x32xf32> to vector<8x32xf32>
    %c1_i32 = arith.constant 1 : i32
    %3 = tpu.dynamic_rotate %2 by %c1_i32 dim 0 : vector<8x32xf32>, i32 -> vector<8x32xf32>
    %4 = tpu.iota {dimensions = array<i32: 0>} : vector<8x1xi32>
    %c1_i32_2 = arith.constant 1 : i32
    %5 = vector.broadcast %c1_i32_2 : i32 to vector<8x1xi32>
    %6 = arith.cmpi slt, %4, %5 : vector<8x1xi32>
    %cst = arith.constant 0.000000e+00 : f32
    %7 = vector.shape_cast %6 : vector<8x1xi1> to vector<8x1xi1>
    %8 = vector.broadcast %7 : vector<8x1xi1> to vector<8x32xi1>
    %9 = vector.broadcast %cst : f32 to vector<8x32xf32>
    %10 = arith.select %8, %9, %3 : vector<8x32xi1>, vector<8x32xf32>
    %c0_3 = arith.constant 0 : index
    %c0_4 = arith.constant 0 : index
    %11 = vector.load %arg4[%c0_3, %c0_4] : memref<1x32xf32, #tpu.memory_space<vmem>>, vector<1x32xf32>
    %c0_5 = arith.constant 0 : index
    %c0_6 = arith.constant 0 : index
    %12 = vector.load %arg5[%c0_5, %c0_6] : memref<1x32xf32, #tpu.memory_space<vmem>>, vector<1x32xf32>
    %c0_7 = arith.constant 0 : index
    %c0_8 = arith.constant 0 : index
    %13 = vector.load %arg6[%c0_7, %c0_8] : memref<1x32xf32, #tpu.memory_space<vmem>>, vector<1x32xf32>
    %14 = vector.broadcast %11 : vector<1x32xf32> to vector<8x32xf32>
    %15 = arith.mulf %2, %14 : vector<8x32xf32>
    %cst_9 = arith.constant 1.000000e+00 : f32
    %16 = vector.broadcast %cst_9 : f32 to vector<1x32xf32>
    %17 = arith.subf %16, %11 : vector<1x32xf32>
    %18 = vector.broadcast %17 : vector<1x32xf32> to vector<8x32xf32>
    %19 = arith.mulf %10, %18 : vector<8x32xf32>
    %20 = arith.addf %15, %19 : vector<8x32xf32>
    %21 = vector.broadcast %12 : vector<1x32xf32> to vector<8x32xf32>
    %22 = arith.mulf %2, %21 : vector<8x32xf32>
    %cst_10 = arith.constant 1.000000e+00 : f32
    %23 = vector.broadcast %cst_10 : f32 to vector<1x32xf32>
    %24 = arith.subf %23, %12 : vector<1x32xf32>
    %25 = vector.broadcast %24 : vector<1x32xf32> to vector<8x32xf32>
    %26 = arith.mulf %10, %25 : vector<8x32xf32>
    %27 = arith.addf %22, %26 : vector<8x32xf32>
    %28 = vector.broadcast %13 : vector<1x32xf32> to vector<8x32xf32>
    %29 = arith.mulf %2, %28 : vector<8x32xf32>
    %cst_11 = arith.constant 1.000000e+00 : f32
    %30 = vector.broadcast %cst_11 : f32 to vector<1x32xf32>
    %31 = arith.subf %30, %13 : vector<1x32xf32>
    %32 = vector.broadcast %31 : vector<1x32xf32> to vector<8x32xf32>
    %33 = arith.mulf %10, %32 : vector<8x32xf32>
    %34 = arith.addf %29, %33 : vector<8x32xf32>
    %35 = arith.negf %34 : vector<8x32xf32>
    %36 = math.exp %35 : vector<8x32xf32>
    %cst_12 = arith.constant 1.000000e+00 : f32
    %37 = vector.broadcast %cst_12 : f32 to vector<8x32xf32>
    %38 = arith.addf %37, %36 : vector<8x32xf32>
    %39 = arith.divf %37, %38 : vector<8x32xf32>
    %c0_13 = arith.constant 0 : index
    %c0_14 = arith.constant 0 : index
    %40 = vector.load %arg7[%c0_13, %c0_14] : memref<32x32xf32, #tpu.memory_space<vmem>>, vector<32x32xf32>
    %cst_15 = arith.constant dense<0.000000e+00> : vector<8x32xf32>
    %41 = tpu.matmul %20, %40, %cst_15 {dimension_numbers = #tpu.dot_dimension_numbers<[1], [0], [0], [1], [0, 0, 1, 1], [], []>} : vector<8x32xf32>, vector<32x32xf32>, vector<8x32xf32> -> vector<8x32xf32>
    %42 = vector.shape_cast %41 : vector<8x32xf32> to vector<8x1x32xf32>
    %c0_16 = arith.constant 0 : index
    %c0_17 = arith.constant 0 : index
    %c0_18 = arith.constant 0 : index
    %43 = vector.load %arg13[%c0_16, %c0_17, %c0_18] : memref<8x1x32xf32, #tpu.memory_space<vmem>>, vector<8x1x32xf32>
    tpu.vector_store %arg13[%c0_16, %c0_17, %c0_18], %42 {strides = array<i32>} : memref<8x1x32xf32, #tpu.memory_space<vmem>>, vector<8x1x32xf32>,
    %c0_19 = arith.constant 0 : index
    %c0_20 = arith.constant 0 : index
    %44 = vector.load %arg8[%c0_19, %c0_20] : memref<32x32xf32, #tpu.memory_space<vmem>>, vector<32x32xf32>
    %cst_21 = arith.constant dense<0.000000e+00> : vector<8x32xf32>
    %45 = tpu.matmul %27, %44, %cst_21 {dimension_numbers = #tpu.dot_dimension_numbers<[1], [0], [0], [1], [0, 0, 1, 1], [], []>} : vector<8x32xf32>, vector<32x32xf32>, vector<8x32xf32> -> vector<8x32xf32>
    %46 = vector.shape_cast %45 : vector<8x32xf32> to vector<8x1x32xf32>
    %c0_22 = arith.constant 0 : index
    %c0_23 = arith.constant 0 : index
    %c0_24 = arith.constant 0 : index
    %47 = vector.load %arg14[%c0_22, %c0_23, %c0_24] : memref<8x1x32xf32, #tpu.memory_space<vmem>>, vector<8x1x32xf32>
    tpu.vector_store %arg14[%c0_22, %c0_23, %c0_24], %46 {strides = array<i32>} : memref<8x1x32xf32, #tpu.memory_space<vmem>>, vector<8x1x32xf32>,
    %c0_25 = arith.constant 0 : index
    %c0_26 = arith.constant 0 : index
    %48 = vector.load %arg9[%c0_25, %c0_26] : memref<32x32xf32, #tpu.memory_space<vmem>>, vector<32x32xf32>
    %cst_27 = arith.constant dense<0.000000e+00> : vector<8x32xf32>
    %49 = tpu.matmul %39, %48, %cst_27 {dimension_numbers = #tpu.dot_dimension_numbers<[1], [0], [0], [1], [0, 0, 1, 1], [], []>} : vector<8x32xf32>, vector<32x32xf32>, vector<8x32xf32> -> vector<8x32xf32>
    %c0_28 = arith.constant 0 : index
    %c0_29 = arith.constant 0 : index
    %50 = vector.load %arg2[%c0_28, %c0_29] : memref<1x32xf32, #tpu.memory_space<vmem>>, vector<1x32xf32>
    %c0_30 = arith.constant 0 : index
    %c0_31 = arith.constant 0 : index
    %51 = vector.load %arg3[%c0_30, %c0_31] : memref<1x32xf32, #tpu.memory_space<vmem>>, vector<1x32xf32>
    %c0_32 = arith.constant 0 : index
    %c0_33 = arith.constant 0 : index
    %52 = vector.load %arg3[%c0_32, %c0_33] : memref<1x32xf32, #tpu.memory_space<vmem>>, vector<1x32xf32>
    %cst_34 = arith.constant 0.000000e+00 : f32
    %53 = vector.broadcast %cst_34 : f32 to vector<1x32xf32>
    %54 = arith.subf %53, %52 : vector<1x32xf32>
    %cst_35 = arith.constant 0.000000e+00 : f32
    %55 = vector.broadcast %cst_35 : f32 to vector<1x32xf32>
    %c0_i32 = arith.constant 0 : i32
    %56 = arith.index_cast %c0_i32 : i32 to index
    %c0_36 = arith.constant 0 : index
    %c0_37 = arith.constant 0 : index
    %57 = vector.load %arg13[%56, %c0_36, %c0_37] : memref<8x1x32xf32, #tpu.memory_space<vmem>>, vector<1x1x32xf32>
    %58 = vector.shape_cast %57 : vector<1x1x32xf32> to vector<1x32xf32>
    %59 = arith.index_cast %c0_i32 : i32 to index
    %c0_38 = arith.constant 0 : index
    %c0_39 = arith.constant 0 : index
    %60 = vector.load %arg14[%59, %c0_38, %c0_39] : memref<8x1x32xf32, #tpu.memory_space<vmem>>, vector<1x1x32xf32>
    %61 = vector.shape_cast %60 : vector<1x1x32xf32> to vector<1x32xf32>
    %62 = arith.addf %50, %58 : vector<1x32xf32>
    %63 = arith.maximumf %62, %51 : vector<1x32xf32>
    %64 = arith.subf %54, %63 : vector<1x32xf32>
    %65 = math.exp %64 : vector<1x32xf32>
    %66 = arith.subf %62, %63 : vector<1x32xf32>
    %67 = math.exp %66 : vector<1x32xf32>
    %68 = arith.mulf %65, %55 : vector<1x32xf32>
    %69 = arith.mulf %67, %61 : vector<1x32xf32>
    %70 = arith.addf %68, %69 : vector<1x32xf32>
    %71 = arith.mulf %65, %55 : vector<1x32xf32>
    %72 = arith.addf %71, %67 : vector<1x32xf32>
    %73 = arith.index_cast %c0_i32 : i32 to index
    %c0_40 = arith.constant 0 : index
    %c0_41 = arith.constant 0 : index
    %74 = vector.load %arg13[%73, %c0_40, %c0_41] : memref<8x1x32xf32, #tpu.memory_space<vmem>>, vector<1x1x32xf32>
    %75 = vector.shape_cast %74 : vector<1x1x32xf32> to vector<1x32xf32>
    %76 = vector.shape_cast %70 : vector<1x32xf32> to vector<1x1x32xf32>
    tpu.vector_store %arg13[%73, %c0_40, %c0_41], %76 {strides = array<i32>} : memref<8x1x32xf32, #tpu.memory_space<vmem>>, vector<1x1x32xf32>,
    %77 = arith.index_cast %c0_i32 : i32 to index
    %c0_42 = arith.constant 0 : index
    %c0_43 = arith.constant 0 : index
    %78 = vector.load %arg14[%77, %c0_42, %c0_43] : memref<8x1x32xf32, #tpu.memory_space<vmem>>, vector<1x1x32xf32>
    %79 = vector.shape_cast %78 : vector<1x1x32xf32> to vector<1x32xf32>
    %80 = vector.shape_cast %72 : vector<1x32xf32> to vector<1x1x32xf32>
    tpu.vector_store %arg14[%77, %c0_42, %c0_43], %80 {strides = array<i32>} : memref<8x1x32xf32, #tpu.memory_space<vmem>>, vector<1x1x32xf32>,
    %c1_i32_44 = arith.constant 1 : i32
    %81 = arith.index_cast %c1_i32_44 : i32 to index
    %c0_45 = arith.constant 0 : index
    %c0_46 = arith.constant 0 : index
    %82 = vector.load %arg13[%81, %c0_45, %c0_46] : memref<8x1x32xf32, #tpu.memory_space<vmem>>, vector<1x1x32xf32>
    %83 = vector.shape_cast %82 : vector<1x1x32xf32> to vector<1x32xf32>
    %84 = arith.index_cast %c1_i32_44 : i32 to index
    %c0_47 = arith.constant 0 : index
    %c0_48 = arith.constant 0 : index
    %85 = vector.load %arg14[%84, %c0_47, %c0_48] : memref<8x1x32xf32, #tpu.memory_space<vmem>>, vector<1x1x32xf32>
    %86 = vector.shape_cast %85 : vector<1x1x32xf32> to vector<1x32xf32>
    %87 = arith.addf %50, %83 : vector<1x32xf32>
    %88 = arith.maximumf %87, %51 : vector<1x32xf32>
    %89 = arith.subf %54, %88 : vector<1x32xf32>
    %90 = math.exp %89 : vector<1x32xf32>
    %91 = arith.subf %87, %88 : vector<1x32xf32>
    %92 = math.exp %91 : vector<1x32xf32>
    %93 = arith.mulf %90, %70 : vector<1x32xf32>
    %94 = arith.mulf %92, %86 : vector<1x32xf32>
    %95 = arith.addf %93, %94 : vector<1x32xf32>
    %96 = arith.mulf %90, %72 : vector<1x32xf32>
    %97 = arith.addf %96, %92 : vector<1x32xf32>
    %98 = arith.index_cast %c1_i32_44 : i32 to index
    %c0_49 = arith.constant 0 : index
    %c0_50 = arith.constant 0 : index
    %99 = vector.load %arg13[%98, %c0_49, %c0_50] : memref<8x1x32xf32, #tpu.memory_space<vmem>>, vector<1x1x32xf32>
    %100 = vector.shape_cast %99 : vector<1x1x32xf32> to vector<1x32xf32>
    %101 = vector.shape_cast %95 : vector<1x32xf32> to vector<1x1x32xf32>
    tpu.vector_store %arg13[%98, %c0_49, %c0_50], %101 {strides = array<i32>} : memref<8x1x32xf32, #tpu.memory_space<vmem>>, vector<1x1x32xf32>,
    %102 = arith.index_cast %c1_i32_44 : i32 to index
    %c0_51 = arith.constant 0 : index
    %c0_52 = arith.constant 0 : index
    %103 = vector.load %arg14[%102, %c0_51, %c0_52] : memref<8x1x32xf32, #tpu.memory_space<vmem>>, vector<1x1x32xf32>
    %104 = vector.shape_cast %103 : vector<1x1x32xf32> to vector<1x32xf32>
    %105 = vector.shape_cast %97 : vector<1x32xf32> to vector<1x1x32xf32>
    tpu.vector_store %arg14[%102, %c0_51, %c0_52], %105 {strides = array<i32>} : memref<8x1x32xf32, #tpu.memory_space<vmem>>, vector<1x1x32xf32>,
    %c2_i32 = arith.constant 2 : i32
    %106 = arith.index_cast %c2_i32 : i32 to index
    %c0_53 = arith.constant 0 : index
    %c0_54 = arith.constant 0 : index
    %107 = vector.load %arg13[%106, %c0_53, %c0_54] : memref<8x1x32xf32, #tpu.memory_space<vmem>>, vector<1x1x32xf32>
    %108 = vector.shape_cast %107 : vector<1x1x32xf32> to vector<1x32xf32>
    %109 = arith.index_cast %c2_i32 : i32 to index
    %c0_55 = arith.constant 0 : index
    %c0_56 = arith.constant 0 : index
    %110 = vector.load %arg14[%109, %c0_55, %c0_56] : memref<8x1x32xf32, #tpu.memory_space<vmem>>, vector<1x1x32xf32>
    %111 = vector.shape_cast %110 : vector<1x1x32xf32> to vector<1x32xf32>
    %112 = arith.addf %50, %108 : vector<1x32xf32>
    %113 = arith.maximumf %112, %51 : vector<1x32xf32>
    %114 = arith.subf %54, %113 : vector<1x32xf32>
    %115 = math.exp %114 : vector<1x32xf32>
    %116 = arith.subf %112, %113 : vector<1x32xf32>
    %117 = math.exp %116 : vector<1x32xf32>
    %118 = arith.mulf %115, %95 : vector<1x32xf32>
    %119 = arith.mulf %117, %111 : vector<1x32xf32>
    %120 = arith.addf %118, %119 : vector<1x32xf32>
    %121 = arith.mulf %115, %97 : vector<1x32xf32>
    %122 = arith.addf %121, %117 : vector<1x32xf32>
    %123 = arith.index_cast %c2_i32 : i32 to index
    %c0_57 = arith.constant 0 : index
    %c0_58 = arith.constant 0 : index
    %124 = vector.load %arg13[%123, %c0_57, %c0_58] : memref<8x1x32xf32, #tpu.memory_space<vmem>>, vector<1x1x32xf32>
    %125 = vector.shape_cast %124 : vector<1x1x32xf32> to vector<1x32xf32>
    %126 = vector.shape_cast %120 : vector<1x32xf32> to vector<1x1x32xf32>
    tpu.vector_store %arg13[%123, %c0_57, %c0_58], %126 {strides = array<i32>} : memref<8x1x32xf32, #tpu.memory_space<vmem>>, vector<1x1x32xf32>,
    %127 = arith.index_cast %c2_i32 : i32 to index
    %c0_59 = arith.constant 0 : index
    %c0_60 = arith.constant 0 : index
    %128 = vector.load %arg14[%127, %c0_59, %c0_60] : memref<8x1x32xf32, #tpu.memory_space<vmem>>, vector<1x1x32xf32>
    %129 = vector.shape_cast %128 : vector<1x1x32xf32> to vector<1x32xf32>
    %130 = vector.shape_cast %122 : vector<1x32xf32> to vector<1x1x32xf32>
    tpu.vector_store %arg14[%127, %c0_59, %c0_60], %130 {strides = array<i32>} : memref<8x1x32xf32, #tpu.memory_space<vmem>>, vector<1x1x32xf32>,
    %c3_i32 = arith.constant 3 : i32
    %131 = arith.index_cast %c3_i32 : i32 to index
    %c0_61 = arith.constant 0 : index
    %c0_62 = arith.constant 0 : index
    %132 = vector.load %arg13[%131, %c0_61, %c0_62] : memref<8x1x32xf32, #tpu.memory_space<vmem>>, vector<1x1x32xf32>
    %133 = vector.shape_cast %132 : vector<1x1x32xf32> to vector<1x32xf32>
    %134 = arith.index_cast %c3_i32 : i32 to index
    %c0_63 = arith.constant 0 : index
    %c0_64 = arith.constant 0 : index
    %135 = vector.load %arg14[%134, %c0_63, %c0_64] : memref<8x1x32xf32, #tpu.memory_space<vmem>>, vector<1x1x32xf32>
    %136 = vector.shape_cast %135 : vector<1x1x32xf32> to vector<1x32xf32>
    %137 = arith.addf %50, %133 : vector<1x32xf32>
    %138 = arith.maximumf %137, %51 : vector<1x32xf32>
    %139 = arith.subf %54, %138 : vector<1x32xf32>
    %140 = math.exp %139 : vector<1x32xf32>
    %141 = arith.subf %137, %138 : vector<1x32xf32>
    %142 = math.exp %141 : vector<1x32xf32>
    %143 = arith.mulf %140, %120 : vector<1x32xf32>
    %144 = arith.mulf %142, %136 : vector<1x32xf32>
    %145 = arith.addf %143, %144 : vector<1x32xf32>
    %146 = arith.mulf %140, %122 : vector<1x32xf32>
    %147 = arith.addf %146, %142 : vector<1x32xf32>
    %148 = arith.index_cast %c3_i32 : i32 to index
    %c0_65 = arith.constant 0 : index
    %c0_66 = arith.constant 0 : index
    %149 = vector.load %arg13[%148, %c0_65, %c0_66] : memref<8x1x32xf32, #tpu.memory_space<vmem>>, vector<1x1x32xf32>
    %150 = vector.shape_cast %149 : vector<1x1x32xf32> to vector<1x32xf32>
    %151 = vector.shape_cast %145 : vector<1x32xf32> to vector<1x1x32xf32>
    tpu.vector_store %arg13[%148, %c0_65, %c0_66], %151 {strides = array<i32>} : memref<8x1x32xf32, #tpu.memory_space<vmem>>, vector<1x1x32xf32>,
    %152 = arith.index_cast %c3_i32 : i32 to index
    %c0_67 = arith.constant 0 : index
    %c0_68 = arith.constant 0 : index
    %153 = vector.load %arg14[%152, %c0_67, %c0_68] : memref<8x1x32xf32, #tpu.memory_space<vmem>>, vector<1x1x32xf32>
    %154 = vector.shape_cast %153 : vector<1x1x32xf32> to vector<1x32xf32>
    %155 = vector.shape_cast %147 : vector<1x32xf32> to vector<1x1x32xf32>
    tpu.vector_store %arg14[%152, %c0_67, %c0_68], %155 {strides = array<i32>} : memref<8x1x32xf32, #tpu.memory_space<vmem>>, vector<1x1x32xf32>,
    %c4_i32 = arith.constant 4 : i32
    %156 = arith.index_cast %c4_i32 : i32 to index
    %c0_69 = arith.constant 0 : index
    %c0_70 = arith.constant 0 : index
    %157 = vector.load %arg13[%156, %c0_69, %c0_70] : memref<8x1x32xf32, #tpu.memory_space<vmem>>, vector<1x1x32xf32>
    %158 = vector.shape_cast %157 : vector<1x1x32xf32> to vector<1x32xf32>
    %159 = arith.index_cast %c4_i32 : i32 to index
    %c0_71 = arith.constant 0 : index
    %c0_72 = arith.constant 0 : index
    %160 = vector.load %arg14[%159, %c0_71, %c0_72] : memref<8x1x32xf32, #tpu.memory_space<vmem>>, vector<1x1x32xf32>
    %161 = vector.shape_cast %160 : vector<1x1x32xf32> to vector<1x32xf32>
    %162 = arith.addf %50, %158 : vector<1x32xf32>
    %163 = arith.maximumf %162, %51 : vector<1x32xf32>
    %164 = arith.subf %54, %163 : vector<1x32xf32>
    %165 = math.exp %164 : vector<1x32xf32>
    %166 = arith.subf %162, %163 : vector<1x32xf32>
    %167 = math.exp %166 : vector<1x32xf32>
    %168 = arith.mulf %165, %145 : vector<1x32xf32>
    %169 = arith.mulf %167, %161 : vector<1x32xf32>
    %170 = arith.addf %168, %169 : vector<1x32xf32>
    %171 = arith.mulf %165, %147 : vector<1x32xf32>
    %172 = arith.addf %171, %167 : vector<1x32xf32>
    %173 = arith.index_cast %c4_i32 : i32 to index
    %c0_73 = arith.constant 0 : index
    %c0_74 = arith.constant 0 : index
    %174 = vector.load %arg13[%173, %c0_73, %c0_74] : memref<8x1x32xf32, #tpu.memory_space<vmem>>, vector<1x1x32xf32>
    %175 = vector.shape_cast %174 : vector<1x1x32xf32> to vector<1x32xf32>
    %176 = vector.shape_cast %170 : vector<1x32xf32> to vector<1x1x32xf32>
    tpu.vector_store %arg13[%173, %c0_73, %c0_74], %176 {strides = array<i32>} : memref<8x1x32xf32, #tpu.memory_space<vmem>>, vector<1x1x32xf32>,
    %177 = arith.index_cast %c4_i32 : i32 to index
    %c0_75 = arith.constant 0 : index
    %c0_76 = arith.constant 0 : index
    %178 = vector.load %arg14[%177, %c0_75, %c0_76] : memref<8x1x32xf32, #tpu.memory_space<vmem>>, vector<1x1x32xf32>
    %179 = vector.shape_cast %178 : vector<1x1x32xf32> to vector<1x32xf32>
    %180 = vector.shape_cast %172 : vector<1x32xf32> to vector<1x1x32xf32>
    tpu.vector_store %arg14[%177, %c0_75, %c0_76], %180 {strides = array<i32>} : memref<8x1x32xf32, #tpu.memory_space<vmem>>, vector<1x1x32xf32>,
    %c5_i32 = arith.constant 5 : i32
    %181 = arith.index_cast %c5_i32 : i32 to index
    %c0_77 = arith.constant 0 : index
    %c0_78 = arith.constant 0 : index
    %182 = vector.load %arg13[%181, %c0_77, %c0_78] : memref<8x1x32xf32, #tpu.memory_space<vmem>>, vector<1x1x32xf32>
    %183 = vector.shape_cast %182 : vector<1x1x32xf32> to vector<1x32xf32>
    %184 = arith.index_cast %c5_i32 : i32 to index
    %c0_79 = arith.constant 0 : index
    %c0_80 = arith.constant 0 : index
    %185 = vector.load %arg14[%184, %c0_79, %c0_80] : memref<8x1x32xf32, #tpu.memory_space<vmem>>, vector<1x1x32xf32>
    %186 = vector.shape_cast %185 : vector<1x1x32xf32> to vector<1x32xf32>
    %187 = arith.addf %50, %183 : vector<1x32xf32>
    %188 = arith.maximumf %187, %51 : vector<1x32xf32>
    %189 = arith.subf %54, %188 : vector<1x32xf32>
    %190 = math.exp %189 : vector<1x32xf32>
    %191 = arith.subf %187, %188 : vector<1x32xf32>
    %192 = math.exp %191 : vector<1x32xf32>
    %193 = arith.mulf %190, %170 : vector<1x32xf32>
    %194 = arith.mulf %192, %186 : vector<1x32xf32>
    %195 = arith.addf %193, %194 : vector<1x32xf32>
    %196 = arith.mulf %190, %172 : vector<1x32xf32>
    %197 = arith.addf %196, %192 : vector<1x32xf32>
    %198 = arith.index_cast %c5_i32 : i32 to index
    %c0_81 = arith.constant 0 : index
    %c0_82 = arith.constant 0 : index
    %199 = vector.load %arg13[%198, %c0_81, %c0_82] : memref<8x1x32xf32, #tpu.memory_space<vmem>>, vector<1x1x32xf32>
    %200 = vector.shape_cast %199 : vector<1x1x32xf32> to vector<1x32xf32>
    %201 = vector.shape_cast %195 : vector<1x32xf32> to vector<1x1x32xf32>
    tpu.vector_store %arg13[%198, %c0_81, %c0_82], %201 {strides = array<i32>} : memref<8x1x32xf32, #tpu.memory_space<vmem>>, vector<1x1x32xf32>,
    %202 = arith.index_cast %c5_i32 : i32 to index
    %c0_83 = arith.constant 0 : index
    %c0_84 = arith.constant 0 : index
    %203 = vector.load %arg14[%202, %c0_83, %c0_84] : memref<8x1x32xf32, #tpu.memory_space<vmem>>, vector<1x1x32xf32>
    %204 = vector.shape_cast %203 : vector<1x1x32xf32> to vector<1x32xf32>
    %205 = vector.shape_cast %197 : vector<1x32xf32> to vector<1x1x32xf32>
    tpu.vector_store %arg14[%202, %c0_83, %c0_84], %205 {strides = array<i32>} : memref<8x1x32xf32, #tpu.memory_space<vmem>>, vector<1x1x32xf32>,
    %c6_i32 = arith.constant 6 : i32
    %206 = arith.index_cast %c6_i32 : i32 to index
    %c0_85 = arith.constant 0 : index
    %c0_86 = arith.constant 0 : index
    %207 = vector.load %arg13[%206, %c0_85, %c0_86] : memref<8x1x32xf32, #tpu.memory_space<vmem>>, vector<1x1x32xf32>
    %208 = vector.shape_cast %207 : vector<1x1x32xf32> to vector<1x32xf32>
    %209 = arith.index_cast %c6_i32 : i32 to index
    %c0_87 = arith.constant 0 : index
    %c0_88 = arith.constant 0 : index
    %210 = vector.load %arg14[%209, %c0_87, %c0_88] : memref<8x1x32xf32, #tpu.memory_space<vmem>>, vector<1x1x32xf32>
    %211 = vector.shape_cast %210 : vector<1x1x32xf32> to vector<1x32xf32>
    %212 = arith.addf %50, %208 : vector<1x32xf32>
    %213 = arith.maximumf %212, %51 : vector<1x32xf32>
    %214 = arith.subf %54, %213 : vector<1x32xf32>
    %215 = math.exp %214 : vector<1x32xf32>
    %216 = arith.subf %212, %213 : vector<1x32xf32>
    %217 = math.exp %216 : vector<1x32xf32>
    %218 = arith.mulf %215, %195 : vector<1x32xf32>
    %219 = arith.mulf %217, %211 : vector<1x32xf32>
    %220 = arith.addf %218, %219 : vector<1x32xf32>
    %221 = arith.mulf %215, %197 : vector<1x32xf32>
    %222 = arith.addf %221, %217 : vector<1x32xf32>
    %223 = arith.index_cast %c6_i32 : i32 to index
    %c0_89 = arith.constant 0 : index
    %c0_90 = arith.constant 0 : index
    %224 = vector.load %arg13[%223, %c0_89, %c0_90] : memref<8x1x32xf32, #tpu.memory_space<vmem>>, vector<1x1x32xf32>
    %225 = vector.shape_cast %224 : vector<1x1x32xf32> to vector<1x32xf32>
    %226 = vector.shape_cast %220 : vector<1x32xf32> to vector<1x1x32xf32>
    tpu.vector_store %arg13[%223, %c0_89, %c0_90], %226 {strides = array<i32>} : memref<8x1x32xf32, #tpu.memory_space<vmem>>, vector<1x1x32xf32>,
    %227 = arith.index_cast %c6_i32 : i32 to index
    %c0_91 = arith.constant 0 : index
    %c0_92 = arith.constant 0 : index
    %228 = vector.load %arg14[%227, %c0_91, %c0_92] : memref<8x1x32xf32, #tpu.memory_space<vmem>>, vector<1x1x32xf32>
    %229 = vector.shape_cast %228 : vector<1x1x32xf32> to vector<1x32xf32>
    %230 = vector.shape_cast %222 : vector<1x32xf32> to vector<1x1x32xf32>
    tpu.vector_store %arg14[%227, %c0_91, %c0_92], %230 {strides = array<i32>} : memref<8x1x32xf32, #tpu.memory_space<vmem>>, vector<1x1x32xf32>,
    %c7_i32 = arith.constant 7 : i32
    %231 = arith.index_cast %c7_i32 : i32 to index
    %c0_93 = arith.constant 0 : index
    %c0_94 = arith.constant 0 : index
    %232 = vector.load %arg13[%231, %c0_93, %c0_94] : memref<8x1x32xf32, #tpu.memory_space<vmem>>, vector<1x1x32xf32>
    %233 = vector.shape_cast %232 : vector<1x1x32xf32> to vector<1x32xf32>
    %234 = arith.index_cast %c7_i32 : i32 to index
    %c0_95 = arith.constant 0 : index
    %c0_96 = arith.constant 0 : index
    %235 = vector.load %arg14[%234, %c0_95, %c0_96] : memref<8x1x32xf32, #tpu.memory_space<vmem>>, vector<1x1x32xf32>
    %236 = vector.shape_cast %235 : vector<1x1x32xf32> to vector<1x32xf32>
    %237 = arith.addf %50, %233 : vector<1x32xf32>
    %238 = arith.maximumf %237, %51 : vector<1x32xf32>
    %239 = arith.subf %54, %238 : vector<1x32xf32>
    %240 = math.exp %239 : vector<1x32xf32>
    %241 = arith.subf %237, %238 : vector<1x32xf32>
    %242 = math.exp %241 : vector<1x32xf32>
    %243 = arith.mulf %240, %220 : vector<1x32xf32>
    %244 = arith.mulf %242, %236 : vector<1x32xf32>
    %245 = arith.addf %243, %244 : vector<1x32xf32>
    %246 = arith.mulf %240, %222 : vector<1x32xf32>
    %247 = arith.addf %246, %242 : vector<1x32xf32>
    %248 = arith.index_cast %c7_i32 : i32 to index
    %c0_97 = arith.constant 0 : index
    %c0_98 = arith.constant 0 : index
    %249 = vector.load %arg13[%248, %c0_97, %c0_98] : memref<8x1x32xf32, #tpu.memory_space<vmem>>, vector<1x1x32xf32>
    %250 = vector.shape_cast %249 : vector<1x1x32xf32> to vector<1x32xf32>
    %251 = vector.shape_cast %245 : vector<1x32xf32> to vector<1x1x32xf32>
    tpu.vector_store %arg13[%248, %c0_97, %c0_98], %251 {strides = array<i32>} : memref<8x1x32xf32, #tpu.memory_space<vmem>>, vector<1x1x32xf32>,
    %252 = arith.index_cast %c7_i32 : i32 to index
    %c0_99 = arith.constant 0 : index
    %c0_100 = arith.constant 0 : index
    %253 = vector.load %arg14[%252, %c0_99, %c0_100] : memref<8x1x32xf32, #tpu.memory_space<vmem>>, vector<1x1x32xf32>
    %254 = vector.shape_cast %253 : vector<1x1x32xf32> to vector<1x32xf32>
    %255 = vector.shape_cast %247 : vector<1x32xf32> to vector<1x1x32xf32>
    tpu.vector_store %arg14[%252, %c0_99, %c0_100], %255 {strides = array<i32>} : memref<8x1x32xf32, #tpu.memory_space<vmem>>, vector<1x1x32xf32>,
    %c8_i32 = arith.constant 8 : i32
    %c0_101 = arith.constant 0 : index
    %c0_102 = arith.constant 0 : index
    %c0_103 = arith.constant 0 : index
    %256 = vector.load %arg13[%c0_101, %c0_102, %c0_103] : memref<8x1x32xf32, #tpu.memory_space<vmem>>, vector<8x1x32xf32>
    %c0_104 = arith.constant 0 : index
    %c0_105 = arith.constant 0 : index
    %c0_106 = arith.constant 0 : index
    %257 = vector.load %arg14[%c0_104, %c0_105, %c0_106] : memref<8x1x32xf32, #tpu.memory_space<vmem>>, vector<8x1x32xf32>
    %258 = arith.divf %256, %257 : vector<8x1x32xf32>
    %259 = vector.shape_cast %258 : vector<8x1x32xf32> to vector<8x32xf32>
    %260 = arith.mulf %259, %49 : vector<8x32xf32>
    %c0_107 = arith.constant 0 : index
    %c0_108 = arith.constant 0 : index
    %261 = vector.load %arg10[%c0_107, %c0_108] : memref<32x32xf32, #tpu.memory_space<vmem>>, vector<32x32xf32>
    %cst_109 = arith.constant dense<0.000000e+00> : vector<8x32xf32>
    %262 = tpu.matmul %260, %261, %cst_109 {dimension_numbers = #tpu.dot_dimension_numbers<[1], [0], [0], [1], [0, 0, 1, 1], [], []>} : vector<8x32xf32>, vector<32x32xf32>, vector<8x32xf32> -> vector<8x32xf32>
    %c0_110 = arith.constant 0 : index
    %c0_111 = arith.constant 0 : index
    %263 = vector.load %arg11[%c0_110, %c0_111] : memref<1x32xf32, #tpu.memory_space<vmem>>, vector<1x32xf32>
    %264 = vector.broadcast %263 : vector<1x32xf32> to vector<8x32xf32>
    %265 = arith.addf %262, %264 : vector<8x32xf32>
    %266 = vector.shape_cast %265 : vector<8x32xf32> to vector<8x1x32xf32>
    %267 = tpu.transpose %266, [1, 0, 2] : vector<8x1x32xf32> -> vector<1x8x32xf32>
    %c0_112 = arith.constant 0 : index
    %c0_113 = arith.constant 0 : index
    %c0_114 = arith.constant 0 : index
    %268 = vector.load %arg12[%c0_112, %c0_113, %c0_114] : memref<1x8x32xf32, #tpu.memory_space<vmem>>, vector<1x8x32xf32>
    tpu.vector_store %arg12[%c0_112, %c0_113, %c0_114], %267 {strides = array<i32>} : memref<1x8x32xf32, #tpu.memory_space<vmem>>, vector<1x8x32xf32>,
    return
  }
  func.func @transform_0(%arg0: i32) -> (i32, i32, i32) {
    %c0_i32 = arith.constant 0 : i32
    %c0_i32_0 = arith.constant 0 : i32
    %c0_i32_1 = arith.constant 0 : i32
    return %arg0, %c0_i32, %c0_i32_0 : i32, i32, i32
  }
  func.func @transform_1(%arg0: i32) -> (i32, i32) {
    %c0_i32 = arith.constant 0 : i32
    %c0_i32_0 = arith.constant 0 : i32
    %c0_i32_1 = arith.constant 0 : i32
    return %c0_i32, %c0_i32_0 : i32, i32
  }
  func.func @transform_2(%arg0: i32) -> (i32, i32) {
    %c0_i32 = arith.constant 0 : i32
    %c0_i32_0 = arith.constant 0 : i32
    %c0_i32_1 = arith.constant 0 : i32
    return %c0_i32, %c0_i32_0 : i32, i32
  }
  func.func @transform_3(%arg0: i32) -> (i32, i32) {
    %c0_i32 = arith.constant 0 : i32
    %c0_i32_0 = arith.constant 0 : i32
    %c0_i32_1 = arith.constant 0 : i32
    return %c0_i32, %c0_i32_0 : i32, i32
  }
  func.func @transform_4(%arg0: i32) -> (i32, i32) {
    %c0_i32 = arith.constant 0 : i32
    %c0_i32_0 = arith.constant 0 : i32
    %c0_i32_1 = arith.constant 0 : i32
    return %c0_i32, %c0_i32_0 : i32, i32
  }
  func.func @transform_5(%arg0: i32) -> (i32, i32) {
    %c0_i32 = arith.constant 0 : i32
    %c0_i32_0 = arith.constant 0 : i32
    %c0_i32_1 = arith.constant 0 : i32
    return %c0_i32, %c0_i32_0 : i32, i32
  }
  func.func @transform_6(%arg0: i32) -> (i32, i32) {
    %c0_i32 = arith.constant 0 : i32
    %c0_i32_0 = arith.constant 0 : i32
    %c0_i32_1 = arith.constant 0 : i32
    return %c0_i32, %c0_i32_0 : i32, i32
  }
  func.func @transform_7(%arg0: i32) -> (i32, i32) {
    %c0_i32 = arith.constant 0 : i32
    %c0_i32_0 = arith.constant 0 : i32
    %c0_i32_1 = arith.constant 0 : i32
    return %c0_i32, %c0_i32_0 : i32, i32
  }
  func.func @transform_8(%arg0: i32) -> (i32, i32) {
    %c0_i32 = arith.constant 0 : i32
    %c0_i32_0 = arith.constant 0 : i32
    %c0_i32_1 = arith.constant 0 : i32
    return %c0_i32, %c0_i32_0 : i32, i32
  }
  func.func @transform_9(%arg0: i32) -> (i32, i32) {
    %c0_i32 = arith.constant 0 : i32
    %c0_i32_0 = arith.constant 0 : i32
    %c0_i32_1 = arith.constant 0 : i32
    return %c0_i32, %c0_i32_0 : i32, i32
  }
  func.func @transform_10(%arg0: i32) -> (i32, i32) {
    %c0_i32 = arith.constant 0 : i32
    %c0_i32_0 = arith.constant 0 : i32
    %c0_i32_1 = arith.constant 0 : i32
    return %c0_i32, %c0_i32_0 : i32, i32
  }
  func.func @transform_11(%arg0: i32) -> (i32, i32, i32) {
    %c0_i32 = arith.constant 0 : i32
    %c0_i32_0 = arith.constant 0 : i32
    %c0_i32_1 = arith.constant 0 : i32
    return %arg0, %c0_i32, %c0_i32_0 : i32, i32, i32
  }
}

</mosaic_0001>

<bundles_post_ra>
// kernel: tpu_custom_call.1
= control target key start
LH: loop header
LB: loop body
LE: loop exit
PB: predicated region body
PF: predicated region fallthrough
CT: control target
= control target key end

     0   :  { %s2860_s0 = inlined_call_operand.hbm [shape: f32[2,8,32], index: 0, kind: input, shape index: {}]   ;;  %s2861_s1 = inlined_call_operand.hbm [shape: f32[1,32], index: 1, kind: input, shape index: {}]   ;;  %s2862_s2 = inlined_call_operand.vmem [shape: f32[1,32], index: 2, kind: input, shape index: {}]   ;;  %s2863_s3 = inlined_call_operand.vmem [shape: f32[1,32], index: 3, kind: input, shape index: {}]   ;;  %s2864_s4 = inlined_call_operand.vmem [shape: f32[1,32], index: 4, kind: input, shape index: {}]   ;;  %s2865_s5 = inlined_call_operand.vmem [shape: f32[1,32], index: 5, kind: input, shape index: {}]   ;;  %s2866_s6 = inlined_call_operand.hbm [shape: f32[32,32], index: 6, kind: input, shape index: {}]   ;;  %s2867_s7 = inlined_call_operand.hbm [shape: f32[32,32], index: 7, kind: input, shape index: {}]   ;;  %s2868_s8 = inlined_call_operand.hbm [shape: f32[32,32], index: 8, kind: input, shape index: {}]   ;;  %s2869_s9 = inlined_call_operand.hbm [shape: f32[32,32], index: 9, kind: input, shape index: {}]   ;;  %s2870_s10 = inlined_call_operand.vmem [shape: f32[1,32], index: 10, kind: input, shape index: {}]   ;;  %s2871_s11 = inlined_call_operand.hbm [shape: f32[2,8,32], index: 11, kind: output, shape index: {}]  }
   0x1   :  { %2879 = sst [smem:[#allocation21_spill]] %s2861_s1 }
   0x2   :  { %2880 = sst [smem:[#allocation22_spill]] %s2866_s6 }
   0x3   :  { %2881 = sst [smem:[#allocation23_spill]] %s2867_s7 }
   0x4   :  { %2882 = sst [smem:[#allocation24_spill]] %s2868_s8 }
   0x5   :  { %2883 = sst [smem:[#allocation25_spill]] %s2869_s9 }
   0x6   :  { %16 = vsyncpa [#allocation5], 0 }
   0x7   :  { %18 = vsyncpa [#allocation5 + $0x1], 0 }
   0x8   :  { %19 = vsyncpa [#allocation8], 0 }
   0x9   :  { %20 = vsyncpa [#allocation11], 0 }
   0xa   :  { %21 = vsyncpa [#allocation14], 0 }
   0xb   :  { %22 = vsyncpa [#allocation6], 0 }
   0xc   :  { %24 = vsyncpa [#allocation6 + $0x1], 0  ;;  %s2102_s17 = smov 0   ;;  %s2104_s18 = smov 0  }
   0xd   :  { %s2106_s19 = smov 0   ;;  %s2108_s20 = smov 0  }
   0xe LB: > { %s2884_s1 = sld [smem:[#allocation21_spill]]  ;;  %s2126_s24 = sadd.s32 4294967295, %s2031_s20   ;;  %s2031_s20 = sphi %s2108_s20, %s2956_s20   ;;  %s2027_s19 = sphi %s2106_s19, %s2955_s19   ;;  %s2023_s18 = sphi %s2104_s18, %s2954_s18   ;;  %s2019_s17 = sphi %s2102_s17, %s2953_s17  }
   0xf   : > { %p1555_p0 = scmp.ge.s32.totalorder %s2031_s20, 1  ;;  %p51_p1 = scmp.eq.s32.totalorder %s2126_s24, 0 }
  0x10   : > { %p297_p2 = scmp.lt.s32.totalorder %s2031_s20, 3  ;;  %s2033_s26 = smov [#allocation7]  }
  0x11   : > { %s311_s27 = sshll.u32 %s2033_s26, 4  ;;  %s2886_s7 = sld [smem:[#allocation23_spill]]  ;;  %s312_s27 = int_to_ptr.vmem [resolvable:$true] %s311_s27 }
  0x12   : > { %p2131_p3 = pnand %p1555_p0, %p297_p2  ;;  %s2888_s6 = sld [smem:[#allocation22_spill]] }
  0x13   : > { %s2034_s16 = smov [#allocation10]   ;;  %s2035_s22 = smov 128  }
  0x14   : > { %s309_s23 = sshll.u32 %s2884_s1, 4  ;;  %p1612_p5 = pneg %p2131_p3  ;;  %s310_s23 = int_to_ptr.hbm [resolvable:$true] %s309_s23 }
  0x15   : > { %s348_s21 = sshll.u32 %s2034_s16, 4  ;;  %s2036_s26 = smov 8   ;;  %s349_s21 = int_to_ptr.vmem [resolvable:$true] %s348_s21 }
  0x16   : > { %p2143_p6 = pnand %p1612_p5, %p51_p1  ;;  %s2889_s8 = sld [smem:[#allocation24_spill]] }
  0x17   : > { %s346_s30 = sshll.u32 %s2886_s7, 4  ;;  %s2037_s7 = smov [#allocation9]   ;;  %s347_s30 = int_to_ptr.hbm [resolvable:$true] %s346_s30 }
  0x18   : > { %s332_s15 = sshll.u32 %s2888_s6, 4  ;;  %s334_s13 = sshll.u32 %s2037_s7, 4  ;;  %s333_s15 = int_to_ptr.hbm [resolvable:$true] %s332_s15  ;;  %s335_s13 = int_to_ptr.vmem [resolvable:$true] %s334_s13 }
  0x19   : > { %1615 = dma.hbm_to_vmem [thread:$0]  (!%p2143_p6), %s310_s23, 16, %s312_s27, [#allocation8]  }
  0x1a   : > { %1621 = dma.hbm_to_vmem [thread:$0]  (!%p2143_p6), %s347_s30, 512, %s349_s21, [#allocation11], %s2035_s22, %s2035_s22, %s2036_s26  }
  0x1b   : > { %1618 = dma.hbm_to_vmem [thread:$0]  (!%p2143_p6), %s333_s15, 512, %s335_s13, [#allocation8], %s2035_s22, %s2035_s22, %s2036_s26  }
  0x1c   : > { %s360_s1 = sshll.u32 %s2889_s8, 4  ;;  %s2038_s23 = smov [#allocation12]   ;;  %s361_s1 = int_to_ptr.hbm [resolvable:$true] %s360_s1 }
  0x1d   : > { %s362_s27 = sshll.u32 %s2038_s23, 4  ;;  %s2890_s9 = sld [smem:[#allocation25_spill]]  ;;  %s363_s27 = int_to_ptr.vmem [resolvable:$true] %s362_s27 }
  0x1e   : > { %1624 = dma.hbm_to_vmem [thread:$0]  (!%p2143_p6), %s361_s1, 512, %s363_s27, [#allocation11], %s2035_s22, %s2035_s22, %s2036_s26  }
  0x1f   : > { %s2039_s7 = smov [#allocation13]   ;;  %s1554_s15 = sadd.s32 4294967294, %s2031_s20  }
  0x20   : > { %s376_s21 = sshll.u32 %s2039_s7, 4  ;;  %s2168_s28 = sadd.s32 1, %s2031_s20   ;;  %s377_s21 = int_to_ptr.vmem [resolvable:$true] %s376_s21 }
  0x21   : > { %s37_s29 = sadd.s32 1, %s2027_s19  ;;  %s34_s13 = ssub.s32 %s2031_s20, %s2168_s28 }
  0x22   : > { %p44_p7 = scmp.ne.s32.totalorder %s2027_s19, %s2023_s18  ;;  %p35_p8 = scmp.eq.s32.totalorder %s34_s13, 0 }
  0x23   : > { %s374_s16 = sshll.u32 %s2890_s9, 4  ;;  %p45_p9 = scmp.eq.s32.totalorder %s2031_s20, 0  ;;  %s375_s16 = int_to_ptr.hbm [resolvable:$true] %s374_s16 }
  0x24   : > { %1627 = dma.hbm_to_vmem [thread:$0]  (!%p2143_p6), %s375_s16, 512, %s377_s21, [#allocation14], %s2035_s22, %s2035_s22, %s2036_s26  }
  0x25   : > { %p50_p10 = scmp.ne.s32.totalorder %s2023_s18, %s2019_s17  ;;  %p284_p11 = scmp.eq.s32.totalorder %s2126_s24, 1 }
  0x26   : > { %s2180_s1 = scalar_select %p35_p8, %s2027_s19, %s37_s29  }
  0x27   : > { %p2184_p12 = por %p51_p1, %p50_p10  ;;  %p2188_p13 = por %p284_p11, %p44_p7 }
  0x28   : > { %p290_p0 = scmp.eq.s32.totalorder %s1554_s15, 1  ;;  %p46_p2 = por %p45_p9, %p44_p7 }
  0x29   : > { %s393_s26 = sand.u32 1, %s2027_s19   ;;  %p1641_p6 = scmp.lt.s32.totalorder %s2031_s20, 2 }
  0x2a   : > { %p2193_p5 = por %p290_p0, %p50_p10  ;;  %s1562_s27 = sshll.u32 %s393_s26, 3 }
  0x2b   : > { %s1563_s30 = sshll.u32 %s2031_s20, 3  ;;  %s397_s29 = scalar_lea.vmem [#allocation4], %s1562_s27 }
  0x2c   : > { %s401_s7 = scalar_lea.hbm %s2860_s0, %s1563_s30  ;;  %s405_s13 = sshll.u32 %s397_s29, 4  ;;  %s406_s13 = int_to_ptr.vmem [resolvable:$true] %s405_s13 }
  0x2d   : > { %s403_s21 = sshll.u32 %s401_s7, 4  ;;  %p2202_p8 = pnand %p1641_p6, %p46_p2  ;;  %s404_s21 = int_to_ptr.hbm [resolvable:$true] %s403_s21 }
  0x2e   : > { %s394_s6 = scalar_lea.sflag [#allocation5], %s393_s26  ;;  %s1923_s8 = sshra.s32 %s404_s21, 4  ;;  %s1924_s8 = int_to_ptr.hbm [resolvable:$true] %s1923_s8 }
  0x2f   : > { %s1925_s9 = scalar_lea.hbm %s1924_s8, 8  ;;  %p1927_p9 = pneg %p2202_p8 }
  0x30   : > { %p1926_p7 = scmp.ne.s32.totalorder %s1924_s8, %s1925_s9  ;;  %s1930_s27 = scalar_lea.hbm %s2860_s0, 16 }
  0x31   : > { %p1931_p0 = scmp.lt.s32.totalorder %s1924_s8, %s2860_s0  ;;  %p1932_p2 = scmp.lt.s32.totalorder %s1930_s27, %s1925_s9 }
  0x32   : > { %p1928_p10 = pnand %p1927_p9, %p1926_p7 }
  0x33   : > { %p1933_p6 = por %p1932_p2, %p1931_p0 }
  0x34   : > { %p1929_p11 = pneg %p1928_p10 }
  0x36   : > { %p1934_p4 = pnand %p1933_p6, %p1929_p11 }
  0x38   : > { %1937 = shalt.err (!%p1934_p4)
}
  0x39   : > { %1631 = dma.hbm_to_vmem [thread:$0]  (!%p2202_p8), %s404_s21, 128, %s406_s13, %s394_s6  }
  0x3a   : > { %414 = sbr.rel (%p2131_p3) target bundleno = 481 (0x1e1), region = 64  ;;  %s2219_s26 = sand.u32 (!%p2131_p3), 1, %s2023_s18  }
  0x3b   : > { %s1565_s29 = sshll.u32 (!%p2131_p3), %s2219_s26, 3  ;;  %s417_s30 = scalar_lea.sflag (!%p2131_p3), [#allocation5], %s2219_s26 }
  0x3c   : > { %s420_s8 = scalar_lea.vmem (!%p2131_p3), [#allocation4], %s1565_s29 }
  0x3f   : > { %1998 = dma.done.wait (%p2184_p12), %s417_s30, 128  }
  0x40   : > { %2000 = vsyncadd (%p2184_p12), %s417_s30, 4294967168 }
  0x41   : > { %2002 = dma.done.wait (%p51_p1), [#allocation8], 528  }
  0x42   : > { %2004 = vsyncadd (%p51_p1), [#allocation8], 4294966768 }
  0x43   : > { %2006 = dma.done.wait (%p51_p1), [#allocation11], 1024  }
  0x44   : > { %2008 = vsyncadd (%p51_p1), [#allocation11], 4294966272 }
  0x45   : > { %2010 = dma.done.wait (%p51_p1), [#allocation14], 512  }
  0x46   : > { %2012 = vsyncadd (%p51_p1), [#allocation14], 4294966784  ;;  %v2040_v0 = vmov 1983009808   ;;  %v2041_v2 = vmov 1934713408   ;;  %v556_v16 = vlaneseq }
  0x47   : > { %v490_v1 = vunpack.c.l.s4 %v2040_v0  ;;  %v500_v3 = vunpack.c.l.s4 %v2041_v2  ;;  %v840_v5 = vld [vmem:[#allocation9 + $0x18] sm:$0xff]  ;;  %v839_v6 = vld [vmem:[#allocation9 + $0x10] sm:$0xff]  ;;  %vm487_vm0 = vcmask 1047556   ;;  %v838_v9 = vld [vmem:[#allocation9 + $0x8] sm:$0xff]  ;;  %vm534_vm1 = vcmask 1041409   ;;  %s1585_s12 = sshll.u32 %s2126_s24, 3 }
  0x48   : > { %878 = vmatpush.msra.mxu0 %v840_v5  ;;  %v485_v8 = vld [vmem:[%s420_s8] sm:$0xff]  ;;  %v837_v12 = vld [vmem:[#allocation9] sm:$0xff]  ;;  %vm2878_vm2 = vcmask 1042434   ;;  %vm2877_vm3 = vcmask 1043459   ;;  %vm2876_vm4 = vcmask 1044484   ;;  %v2259_v26 = vshrl.u32 %v556_v16, 7  ;;  %s1431_s15 = scalar_lea.hbm %s2871_s11, %s1585_s12 }
  0x49   : > { %v491_v4 = vunpack.c.0.s8 %v490_v1  ;;  %v501_v7 = vunpack.c.0.s8 %v500_v3  ;;  %v486_v10 = vrot.slane %v485_v8, 4  ;;  %v562_v23 = vld [vmem:[%s2863_s3] sm:$0x1]  ;;  %v913_v45 = vld [vmem:[#allocation10 + $0x18] sm:$0xff]  ;;  %vm2875_vm5 = vcmask 1045509   ;;  %v911_v52 = vld [vmem:[#allocation10 + $0x8] sm:$0xff] }
  0x4a   : > { %879 = vmatpush.msra.mxu0 %v839_v6  ;;  %v563_v24 = vld [vmem:[%s2864_s4] sm:$0x1]  ;;  %v576_v34 = vsub.f32 1.0, %v562_v23  ;;  %vm2874_vm6 = vcmask 1046534   ;;  %vm2873_vm7 = vcmask 1047559   ;;  %950 = vmatpush.msra.mxu1 %v913_v45  ;;  %vm558_vm8 = vcmp.lt.s32.totalorder %v2259_v26, 1 }
  0x4b   : > { %v492_v11 = vperm.slane %v485_v8, %v491_v4  ;;  %v488_v13 = vsel %vm487_vm0, 0.0, %v486_v10  ;;  %v564_v27 = vld [vmem:[%s2865_s5] sm:$0x1]  ;;  %v616_v35 = vsub.f32 1.0, %v563_v24  ;;  %v910_v62 = vld [vmem:[#allocation10] sm:$0xff]  ;;  %v984_v63 = vld [vmem:[#allocation12 + $0x18] sm:$0xff] }
  0x4c   : > { %880 = vmatpush.msra.mxu0 %v838_v9  ;;  %v496_v17 = vperm.slane %v488_v13, %v491_v4  ;;  %v656_v39 = vsub.f32 1.0, %v564_v27  ;;  %v1689_v44 = vld [vmem:[%s2863_s3] ss:$0 sm:$0xff]  ;;  %v578_v50 = vperm.slane %v576_v34, 0  ;;  %1021 = vmatpush.msra.mxu2 %v984_v63  ;;  %v982_v13 = vld [vmem:[#allocation12 + $0x8] sm:$0xff]  ;;  %v981_v27 = vld [vmem:[#allocation12] sm:$0xff] }
  0x4d   : > { %v497_v14 = vrot.slane %v492_v11, 4  ;;  %v2242_v15 = vperm.slane %v492_v11, %v501_v7  ;;  %v912_v47 = vld [vmem:[#allocation10 + $0x10] sm:$0xff]  ;;  %v618_v55 = vperm.slane %v616_v35, 0  ;;  %vm2872_vm9 = vcmask 261120   ;;  %s484_s14 = scalar_lea.vmem [#allocation15], %s1565_s29  ;;  %s1435_s16 = sshll.u32 %s1431_s15, 4  ;;  %s1436_s16 = int_to_ptr.hbm [resolvable:$true] %s1435_s16 }
  0x4e   : > { %881 = vmatpush.msra.mxu0 %v837_v12  ;;  %v507_v21 = vrot.slane %v496_v17, 4  ;;  %v2248_v22 = vperm.slane %v496_v17, %v501_v7  ;;  %v1691_v51 = vld [vmem:[%s2865_s5] ss:$0 sm:$0xff]  ;;  %v658_v56 = vperm.slane %v656_v39, 0  ;;  %951 = vmatpush.msra.mxu1 %v912_v47  ;;  %s1433_s27 = sshll.u32 %s484_s14, 4  ;;  %s1421_s7 = scalar_lea.sflag [#allocation6], %s2219_s26  ;;  %s1434_s27 = int_to_ptr.vmem [resolvable:$true] %s1433_s27 }
  0x4f   : > { %v498_v18 = vsel %vm487_vm0, 0.0, %v497_v14  ;;  %v517_v19 = vrot.slane %v2242_v15, 4  ;;  %v568_v58 = vmul.f32 %v1689_v44, %v2242_v15  ;;  %v1690_v61 = vld [vmem:[%s2864_s4] ss:$0 sm:$0xff]  ;;  %s1967_s30 = sshra.s32 %s1436_s16, 4  ;;  %s1973_s9 = scalar_lea.hbm %s2871_s11, 16  ;;  %s1968_s30 = int_to_ptr.hbm [resolvable:$true] %s1967_s30 }
  0x50   : > { %v2246_v20 = vperm.slane %v498_v18, %v501_v7  ;;  %v508_v28 = vsel %vm487_vm0, 0.0, %v507_v21  ;;  %v521_v30 = vrot.slane %v2248_v22, 4  ;;  %v572_v2 = vmul.f32 %v1689_v44, %v2248_v22  ;;  %952 = vmatpush.msra.mxu1 %v911_v52  ;;  %v983_v4 = vld [vmem:[#allocation12 + $0x10] sm:$0xff]  ;;  %s1969_s24 = scalar_lea.hbm %s1968_s30, 8  ;;  %p1974_p12 = scmp.lt.s32.totalorder %s1968_s30, %s2871_s11 }
  0x51   : > { %v2257_v25 = vsel %vm487_vm0, 0.0, %v517_v19  ;;  %v2268_v32 = vperm.slane %v508_v28, %v501_v7  ;;  %v2301_v11 = vmul.f32 %v1691_v51, %v2248_v22  ;;  %v2304_v16 = vmul.f32 %v1690_v61, %v2242_v15  ;;  %1022 = vmatpush.msra.mxu2 %v983_v4  ;;  %p1970_p1 = scmp.ne.s32.totalorder %s1968_s30, %s1969_s24  ;;  %p1975_p8 = scmp.lt.s32.totalorder %s1973_s9, %s1969_s24 }
  0x52   : > { %v519_v29 = vrot.slane %v2246_v20, 4  ;;  %v533_v31 = vrot.slane %v2257_v25, 7  ;;  %v536_v33 = vrot.slane %v2246_v20, 6  ;;  %v522_v37 = vsel %vm487_vm0, 0.0, %v521_v30  ;;  %953 = vmatpush.msra.mxu1 %v910_v62 }
  0x53   : > { %v523_v40 = vrot.slane %v2268_v32, 4  ;;  %v545_v43 = vrot.slane %v522_v37, 3  ;;  %v548_v46 = vrot.slane %v2268_v32, 2  ;;  %v569_v59 = vmul.f32 %v1689_v44, %v2257_v25  ;;  %1023 = vmatpush.msra.mxu2 %v982_v13  ;;  %p1971_p3 = pnand %p1970_p1, %p2188_p13  ;;  %p1976_p7 = por %p1975_p8, %p1974_p12 }
  0x54   : > { %v520_v36 = vsel %vm487_vm0, 0.0, %v519_v29  ;;  %v535_v38 = vsel %vm534_vm1, %v533_v31, %v2242_v15  ;;  %v570_v60 = vmul.f32 %v1689_v44, %v2246_v20  ;;  %v573_v3 = vmul.f32 %v1689_v44, %v522_v37 }
  0x55   : > { %v538_v41 = vsel %vm2878_vm2, %v536_v33, %v535_v38  ;;  %v539_v42 = vrot.slane %v520_v36, 5  ;;  %v524_v48 = vsel %vm487_vm0, 0.0, %v523_v40  ;;  %v571_v1 = vmul.f32 %v1689_v44, %v520_v36  ;;  %1024 = vmatpush.msra.mxu2 %v981_v27  ;;  %p1972_p4 = pneg %p1971_p3 }
  0x56   : > { %v551_v54 = vrot.slane %v524_v48, 1  ;;  %v574_v6 = vmul.f32 %v1689_v44, %v2268_v32  ;;  %v649_v7 = vmul.f32 %v1691_v51, %v2257_v25  ;;  %v651_v8 = vmul.f32 %v1691_v51, %v520_v36 }
  0x57   : > { %v541_v49 = vsel %vm2877_vm3, %v539_v42, %v538_v41  ;;  %v575_v10 = vmul.f32 %v1689_v44, %v524_v48  ;;  %v653_v12 = vmul.f32 %v1691_v51, %v522_v37  ;;  %v655_v14 = vmul.f32 %v1691_v51, %v524_v48  ;;  %p1977_p9 = pnand %p1976_p7, %p1972_p4 }
  0x58   : > { %v544_v53 = vsel %vm2876_vm4, %v521_v30, %v541_v49  ;;  %v2307_v17 = vmul.f32 %v1690_v61, %v2257_v25  ;;  %v2310_v18 = vmul.f32 %v1690_v61, %v2246_v20  ;;  %v2314_v21 = vmul.f32 %v1690_v61, %v520_v36 }
  0x59   : > { %v547_v57 = vsel %vm2875_vm5, %v545_v43, %v544_v53  ;;  %v2317_v23 = vmul.f32 %v1690_v61, %v2248_v22  ;;  %v2319_v24 = vmul.f32 %v1690_v61, %v522_v37  ;;  %v2322_v29 = vmul.f32 %v1690_v61, %v2268_v32 }
  0x5a   : > { %v550_v0 = vsel %vm2874_vm6, %v548_v46, %v547_v57  ;;  %v2324_v25 = vmul.f32 %v1690_v61, %v524_v48  ;;  %v2327_v30 = vmul.f32 %v1691_v51, %v2242_v15  ;;  %v2334_v22 = vmul.f32 %v1691_v51, %v2246_v20 }
  0x5b   : > { %v553_v5 = vsel %vm2873_vm7, %v551_v54, %v550_v0  ;;  %v2337_v33 = vmul.f32 %v1691_v51, %v2268_v32 }
  0x5c   : > { %v555_v9 = vrot.slane %v553_v5, 7 }
  0x5e   : > { %v561_v19 = vsel %vm558_vm8, 0.0, %v555_v9 }
  0x5f   : > { %v580_v28 = vmul.f32 %v578_v50, %v561_v19  ;;  %v2329_v26 = vmul.f32 %v618_v55, %v561_v19  ;;  %v2331_v31 = vmul.f32 %v658_v56, %v561_v19 }
  0x61   : > { %v582_v34 = vrot.slane %v580_v28, 1  ;;  %v583_v35 = vrot.slane %v580_v28, 2  ;;  %v584_v36 = vrot.slane %v580_v28, 3  ;;  %v585_v37 = vrot.slane %v580_v28, 4 }
  0x62   : > { %v586_v38 = vrot.slane %v580_v28, 5  ;;  %v587_v39 = vrot.slane %v580_v28, 6  ;;  %v588_v40 = vrot.slane %v580_v28, 7  ;;  %v597_v15 = vadd.f32 %v580_v28, %v568_v58 }
  0x63   : > { %v598_v41 = vadd.f32 %v582_v34, %v569_v59  ;;  %v599_v42 = vadd.f32 %v583_v35, %v570_v60  ;;  %v600_v43 = vadd.f32 %v584_v36, %v571_v1  ;;  %v601_v44 = vadd.f32 %v585_v37, %v572_v2 }
  0x64   : > { %v602_v45 = vadd.f32 %v586_v38, %v573_v3  ;;  %v603_v20 = vadd.f32 %v587_v39, %v574_v6  ;;  %v604_v46 = vadd.f32 %v588_v40, %v575_v10  ;;  %v662_v32 = vrot.slane %v2331_v31, 1 }
  0x65   : > { %v664_v47 = vrot.slane %v2331_v31, 3  ;;  %v666_v48 = vrot.slane %v2331_v31, 5  ;;  %v668_v49 = vrot.slane %v2331_v31, 7  ;;  %v849_v50 = vrot.slane %v598_v41, 7 }
  0x66   : > { %v678_v51 = vadd.f32 %v662_v32, %v649_v7  ;;  %v851_v52 = vrot.slane %v599_v42, 6  ;;  %v853_v53 = vrot.slane %v600_v43, 5  ;;  %v855_v54 = vrot.slane %v601_v44, 4 }
  0x67   : > { %v680_v55 = vadd.f32 %v664_v47, %v651_v8  ;;  %v682_v56 = vadd.f32 %v666_v48, %v653_v12  ;;  %v684_v57 = vadd.f32 %v668_v49, %v655_v14  ;;  %v850_v58 = vsel %vm534_vm1, %v849_v50, %v597_v15 }
  0x68   : > { %v1573_v59 = vmul.f32 -1.442695, %v678_v51  ;;  %v852_v60 = vsel %vm2878_vm2, %v851_v52, %v850_v58  ;;  %v857_v61 = vrot.slane %v602_v45, 3  ;;  %v859_v62 = vrot.slane %v603_v20, 2 }
  0x69   : > { %v1575_v63 = vmul.f32 -1.442695, %v680_v55  ;;  %v1577_v0 = vmul.f32 -1.442695, %v682_v56  ;;  %v1579_v1 = vmul.f32 -1.442695, %v684_v57  ;;  %v854_v2 = vsel %vm2877_vm3, %v853_v53, %v852_v60 }
  0x6a   : > { %1693 = vpow2.f32 %v1573_v59  ;;  %v856_v3 = vsel %vm2876_vm4, %v855_v54, %v854_v2  ;;  %v861_v4 = vrot.slane %v604_v46, 1  ;;  %v622_v5 = vrot.slane %v2329_v26, 1 }
  0x6b   : > { %1695 = vpow2.f32 %v1575_v63  ;;  %v858_v6 = vsel %vm2875_vm5, %v857_v61, %v856_v3  ;;  %v623_v7 = vrot.slane %v2329_v26, 2  ;;  %v624_v8 = vrot.slane %v2329_v26, 3 }
  0x6c   : > { %1697 = vpow2.f32 %v1577_v0  ;;  %v860_v9 = vsel %vm2874_vm6, %v859_v62, %v858_v6  ;;  %v625_v10 = vrot.slane %v2329_v26, 4  ;;  %v626_v12 = vrot.slane %v2329_v26, 5 }
  0x6d   : > { %1699 = vpow2.f32 %v1579_v1  ;;  %v862_v13 = vsel %vm2873_vm7, %v861_v4, %v860_v9  ;;  %v627_v14 = vrot.slane %v2329_v26, 6  ;;  %v628_v19 = vrot.slane %v2329_v26, 7 }
  0x6e   : > { %1580 = vmatmul.msk.f32.vlgmr.msra.gmra.mxu0 %vm2872_vm9, %v862_v13  ;;  %v637_v27 = vadd.f32 %v2329_v26, %v2304_v16  ;;  %v638_v28 = vadd.f32 %v622_v5, %v2307_v17  ;;  %v639_v34 = vadd.f32 %v623_v7, %v2310_v18  ;;  %v640_v35 = vadd.f32 %v624_v8, %v2314_v21 }
  0x6f   : > { %v641_v36 = vadd.f32 %v625_v10, %v2317_v23  ;;  %v642_v37 = vadd.f32 %v626_v12, %v2319_v24  ;;  %v643_v38 = vadd.f32 %v627_v14, %v2322_v29  ;;  %v644_v39 = vadd.f32 %v628_v19, %v2324_v25 }
  0x70   : > { %v1694_v40 = vpop.eup %1693  ;;  %v922_v15 = vrot.slane %v638_v28, 7  ;;  %v924_v41 = vrot.slane %v639_v34, 6  ;;  %v926_v42 = vrot.slane %v640_v35, 5  ;;  %v663_v16 = vrot.slane %v2331_v31, 2 }
  0x71   : > { %v1696_v26 = vpop.eup %1695  ;;  %v710_v17 = vadd.f32 1.0, %v1694_v40  ;;  %v928_v43 = vrot.slane %v641_v36, 4  ;;  %v930_v18 = vrot.slane %v642_v37, 3  ;;  %v932_v44 = vrot.slane %v643_v38, 2 }
  0x72   : > { %v1698_v21 = vpop.eup %1697  ;;  %v2368_v45 = vadd.f32 1.0, %v1696_v26  ;;  %v923_v23 = vsel %vm534_vm1, %v922_v15, %v637_v27  ;;  %v934_v24 = vrot.slane %v644_v39, 1  ;;  %v665_v29 = vrot.slane %v2331_v31, 4 }
  0x73   : > { %v1700_v25 = vpop.eup %1699  ;;  %v2372_v20 = vadd.f32 1.0, %v1698_v21  ;;  %1701 = vrcp.f32 %v710_v17  ;;  %v925_v46 = vsel %vm2878_vm2, %v924_v41, %v923_v23  ;;  %v667_v32 = vrot.slane %v2331_v31, 6 }
  0x74   : > { %v2376_v47 = vadd.f32 1.0, %v1700_v25  ;;  %1703 = vrcp.f32 %v2368_v45  ;;  %v927_v48 = vsel %vm2877_vm3, %v926_v42, %v925_v46  ;;  %v677_v49 = vadd.f32 %v2331_v31, %v2327_v30 }
  0x75   : > { %1705 = vrcp.f32 %v2372_v20  ;;  %v929_v50 = vsel %vm2876_vm4, %v928_v43, %v927_v48  ;;  %v679_v51 = vadd.f32 %v663_v16, %v2334_v22  ;;  %v681_v52 = vadd.f32 %v665_v29, %v2301_v11 }
  0x76   : > { %v931_v53 = vsel %vm2875_vm5, %v930_v18, %v929_v50  ;;  %v683_v54 = vadd.f32 %v667_v32, %v2337_v33  ;;  %v1572_v55 = vmul.f32 -1.442695, %v677_v49  ;;  %1707 = vrcp.f32 %v2376_v47 }
  0x77   : > { %v933_v56 = vsel %vm2874_vm6, %v932_v44, %v931_v53  ;;  %v1574_v57 = vmul.f32 -1.442695, %v679_v51  ;;  %v1576_v58 = vmul.f32 -1.442695, %v681_v52  ;;  %v741_v11 = vand.u32 2147483647, %v710_v17 }
  0x78   : > { %v935_v30 = vsel %vm2873_vm7, %v934_v24, %v933_v56  ;;  %1709 = vpow2.f32 %v1572_v55  ;;  %v1578_v31 = vmul.f32 -1.442695, %v683_v54  ;;  %v743_v22 = vand.u32 2147483648, %v710_v17 }
  0x79   : > { %v1702_v59 = vpop.eup %1701  ;;  %1581 = vmatmul.msk.f32.vlgmr.msra.gmra.mxu1 %vm2872_vm9, %v935_v30  ;;  %1711 = vpow2.f32 %v1574_v57  ;;  %v771_v61 = vand.u32 2147483647, %v2368_v45  ;;  %vm737_vm10 = vweird.f32 %v710_v17  ;;  %vm767_vm11 = vweird.f32 %v2368_v45  ;;  %v2584_v30 = vld [vmem:[%s2862_s2] sm:$0x1] }
  0x7a   : > { %v2392_v60 = vpop.eup %1703  ;;  %1713 = vpow2.f32 %v1576_v58  ;;  %v733_v33 = vmul.f32 %v1702_v59, %v710_v17  ;;  %vm738_vm12 = vweird.f32 %v1702_v59  ;;  %v773_v1 = vand.u32 2147483648, %v2368_v45 }
  0x7b   : > { %v2395_v62 = vpop.eup %1705  ;;  %1715 = vpow2.f32 %v1578_v31  ;;  %v763_v63 = vmul.f32 %v2392_v60, %v2368_v45  ;;  %vm2405_vm13 = vcmp.eq.f32.partialorder %v741_v11, 8.507059e+37  ;;  %v744_v5 = vor.u32 1.1754944e-38, %v743_v22  ;;  %vm2419_vm8 = vmor %vm737_vm10, %vm738_vm12 }
  0x7c   : > { %v734_v0 = vsub.f32 1.0, %v733_v33  ;;  %v793_v2 = vmul.f32 %v2395_v62, %v2372_v20  ;;  %v2403_v3 = vpop.eup %1707  ;;  %vm768_vm14 = vweird.f32 %v2392_v60  ;;  %vm2410_vm15 = vcmp.eq.f32.partialorder %v771_v61, 8.507059e+37 }
  0x7d   : > { %v764_v6 = vsub.f32 1.0, %v763_v63  ;;  %vm797_vm0 = vweird.f32 %v2372_v20  ;;  %vm798_vm9 = vweird.f32 %v2395_v62  ;;  %v801_v19 = vand.u32 2147483647, %v2372_v20  ;;  %vm2445_vm10 = vmor %vm767_vm11, %vm768_vm14 }
  0x7e   : > { %v1710_v7 = vpop.eup %1709  ;;  %v735_v8 = vmul.f32 %v1702_v59, %v734_v0  ;;  %v794_v10 = vsub.f32 1.0, %v793_v2  ;;  %v803_v27 = vand.u32 2147483648, %v2372_v20  ;;  %v774_v37 = vor.u32 1.1754944e-38, %v773_v1  ;;  %vm2470_vm14 = vmor %vm797_vm0, %vm798_vm9 }
  0x7f   : > { %v1712_v12 = vpop.eup %1711  ;;  %v2415_v13 = vadd.f32 1.0, %v1710_v7  ;;  %v765_v36 = vmul.f32 %v2392_v60, %v764_v6  ;;  %vm2449_vm12 = vcmp.eq.f32.partialorder %v801_v19, 8.507059e+37  ;;  %v823_v44 = vmul.f32 %v2403_v3, %v2376_v47 }
  0x80   : > { %v1714_v28 = vpop.eup %1713  ;;  %v2426_v34 = vadd.f32 1.0, %v1712_v12  ;;  %v736_v35 = vadd.f32 %v1702_v59, %v735_v8  ;;  %v795_v15 = vmul.f32 %v2395_v62, %v794_v10  ;;  %v804_v18 = vor.u32 1.1754944e-38, %v803_v27 }
  0x81   : > { %v1716_v38 = vpop.eup %1715  ;;  %v2429_v39 = vadd.f32 1.0, %v1714_v28  ;;  %1717 = vrcp.f32 %v2415_v13  ;;  %v726_v40 = vand.u32 2147483647, %v2415_v13  ;;  %v728_v42 = vand.u32 2147483648, %v2415_v13 }
  0x82   : > { %v2434_v41 = vadd.f32 1.0, %v1716_v38  ;;  %v740_v16 = vsel %vm2419_vm8, %v1702_v59, %v736_v35  ;;  %1719 = vrcp.f32 %v2426_v34  ;;  %v756_v26 = vand.u32 2147483647, %v2426_v34 }
  0x83   : > { %vm722_vm8 = vweird.f32 %v2415_v13  ;;  %v758_v21 = vand.u32 2147483648, %v2426_v34  ;;  %v766_v23 = vadd.f32 %v2392_v60, %v765_v36  ;;  %1721 = vrcp.f32 %v2429_v39 }
  0x84   : > { %v2461_v45 = vsel %vm2405_vm13, %v744_v5, %v740_v16  ;;  %vm752_vm11 = vweird.f32 %v2426_v34  ;;  %v786_v24 = vand.u32 2147483647, %v2429_v39  ;;  %v788_v29 = vand.u32 2147483648, %v2429_v39 }
  0x85   : > { %vm2474_vm7 = vcmp.eq.f32.partialorder %v726_v40, 8.507059e+37  ;;  %v729_v32 = vor.u32 1.1754944e-38, %v728_v42  ;;  %v770_v48 = vsel %vm2445_vm10, %v2392_v60, %v766_v23  ;;  %v796_v49 = vadd.f32 %v2395_v62, %v795_v15 }
  0x86   : > { %1723 = vrcp.f32 %v2434_v41  ;;  %vm2483_vm13 = vcmp.eq.f32.partialorder %v756_v26, 8.507059e+37  ;;  %v759_v51 = vor.u32 1.1754944e-38, %v758_v21  ;;  %v2489_v52 = vsel %vm2410_vm15, %v774_v37, %v770_v48 }
  0x87   : > { %v1718_v50 = vpop.eup %1717  ;;  %vm782_vm9 = vweird.f32 %v2429_v39  ;;  %v789_v55 = vor.u32 1.1754944e-38, %v788_v29  ;;  %v800_v56 = vsel %vm2470_vm14, %v2395_v62, %v796_v49  ;;  %v816_v57 = vand.u32 2147483647, %v2434_v41 }
  0x88   : > { %v1720_v53 = vpop.eup %1719  ;;  %v718_v54 = vmul.f32 %v1718_v50, %v2415_v13  ;;  %vm723_vm0 = vweird.f32 %v1718_v50  ;;  %vm2498_vm6 = vcmp.eq.f32.partialorder %v786_v24, 8.507059e+37  ;;  %vm812_vm15 = vweird.f32 %v2434_v41 }
  0x89   : > { %v748_v58 = vmul.f32 %v1720_v53, %v2426_v34  ;;  %vm753_vm10 = vweird.f32 %v1720_v53  ;;  %v1722_v31 = vpop.eup %1721  ;;  %v805_v11 = vsel %vm2449_vm12, %v804_v18, %v800_v56  ;;  %v824_v22 = vsub.f32 1.0, %v823_v44  ;;  %vm2515_vm4 = vmor %vm722_vm8, %vm723_vm0 }
  0x8a   : > { %v719_v59 = vsub.f32 1.0, %v718_v54  ;;  %vm827_vm14 = vweird.f32 %v2376_v47  ;;  %v778_v33 = vmul.f32 %v1722_v31, %v2429_v39  ;;  %vm2507_vm5 = vcmp.eq.f32.partialorder %v816_v57, 8.507059e+37  ;;  %vm2532_vm8 = vmor %vm752_vm11, %vm753_vm10 }
  0x8b   : > { %v749_v60 = vsub.f32 1.0, %v748_v58  ;;  %v818_v62 = vand.u32 2147483648, %v2434_v41  ;;  %v825_v2 = vmul.f32 %v2403_v3, %v824_v22  ;;  %vm828_vm12 = vweird.f32 %v2403_v3  ;;  %v2579_v58 = vld [vmem:[#allocation7] sm:$0x1] }
  0x8c   : > { %v1724_v63 = vpop.eup %1723  ;;  %v720_v0 = vmul.f32 %v1718_v50, %v719_v59  ;;  %v831_v4 = vand.u32 2147483647, %v2376_v47  ;;  %v779_v6 = vsub.f32 1.0, %v778_v33  ;;  %vm783_vm3 = vweird.f32 %v1722_v31  ;;  %vm2525_vm2 = vmor %vm827_vm14, %vm828_vm12 }
  0x8d   : > { %v750_v5 = vmul.f32 %v1720_v53, %v749_v60  ;;  %v808_v7 = vmul.f32 %v1724_v63, %v2434_v41  ;;  %vm813_vm0 = vweird.f32 %v1724_v63  ;;  %v826_v12 = vadd.f32 %v2403_v3, %v825_v2  ;;  %vm2543_vm14 = vmor %vm782_vm9, %vm783_vm3 }
  0x8e   : > { %v721_v9 = vadd.f32 %v1718_v50, %v720_v0  ;;  %v833_v13 = vand.u32 2147483648, %v2376_v47  ;;  %v780_v19 = vmul.f32 %v1722_v31, %v779_v6  ;;  %v993_v28 = vrot.slane %v2461_v45, 7  ;;  %vm814_vm3 = vmor %vm812_vm15, %vm813_vm0 }
  0x8f   : > { %v751_v14 = vadd.f32 %v1720_v53, %v750_v5  ;;  %v809_v27 = vsub.f32 1.0, %v808_v7  ;;  %v830_v36 = vsel %vm2525_vm2, %v2403_v3, %v826_v12  ;;  %vm832_vm11 = vcmp.eq.f32.partialorder %v831_v4, 8.507059e+37 }
  0x90   : > { %v725_v35 = vsel %vm2515_vm4, %v1718_v50, %v721_v9  ;;  %v834_v47 = vor.u32 1.1754944e-38, %v833_v13  ;;  %v781_v40 = vadd.f32 %v1722_v31, %v780_v19  ;;  %v819_v42 = vor.u32 1.1754944e-38, %v818_v62 }
  0x91   : > { %v730_v37 = vsel %vm2474_vm7, %v729_v32, %v725_v35  ;;  %v755_v38 = vsel %vm2532_vm8, %v1720_v53, %v751_v14  ;;  %v810_v15 = vmul.f32 %v1724_v63, %v809_v27  ;;  %v997_v16 = vrot.slane %v2489_v52, 5 }
  0x92   : > { %v760_v39 = vsel %vm2483_vm13, %v759_v51, %v755_v38  ;;  %v994_v3 = vsel %vm534_vm1, %v993_v28, %v730_v37  ;;  %v785_v26 = vsel %vm2543_vm14, %v1722_v31, %v781_v40  ;;  %v835_v43 = vsel %vm832_vm11, %v834_v47, %v830_v36 }
  0x93   : > { %v811_v17 = vadd.f32 %v1724_v63, %v810_v15  ;;  %v995_v18 = vrot.slane %v760_v39, 6  ;;  %v790_v44 = vsel %vm2498_vm6, %v789_v55, %v785_v26  ;;  %v1001_v21 = vrot.slane %v805_v11, 3 }
  0x94   : > { %vm2923_vm2 = vcmask 1042434   ;;  %v999_v41 = vrot.slane %v790_v44, 4  ;;  %vm2924_vm1 = vcmask 1043459   ;;  %v1005_v25 = vrot.slane %v835_v43, 1 }
  0x95   : > { %v815_v23 = vsel %vm814_vm3, %v1724_v63, %v811_v17  ;;  %v996_v45 = vsel %vm2923_vm2, %v995_v18, %v994_v3  ;;  %vm2925_vm4 = vcmask 1044484   ;;  %vm2926_vm7 = vcmask 1045509  }
  0x96   : > { %v820_v24 = vsel %vm2507_vm5, %v819_v42, %v815_v23  ;;  %v998_v29 = vsel %vm2924_vm1, %v997_v16, %v996_v45  ;;  %vm2927_vm13 = vcmask 1046534   ;;  %vm2928_vm9 = vcmask 1047559  }
  0x97   : > { %v1000_v46 = vsel %vm2925_vm4, %v999_v41, %v998_v29  ;;  %v1003_v32 = vrot.slane %v820_v24, 2  ;;  %vm2929_vm6 = vcmask 261120   ;;  %vm901_vm10 = vcmask 253952  }
  0x98   : > { %v1002_v48 = vsel %vm2926_vm7, %v1001_v21, %v1000_v46  ;;  %v2590_v59 = vsub.f32 0.0, %v2584_v30 }
  0x99   : > { %v1004_v49 = vsel %vm2927_vm13, %v1003_v32, %v1002_v48 }
  0x9a   : > { %v1006_v50 = vsel %vm2928_vm9, %v1005_v25, %v1004_v49 }
  0x9b   : > { %1582 = vmatmul.msk.f32.vlgmr.msra.gmra.mxu2 %vm2929_vm6, %v1006_v50 }
  0xeb   : > { %v883_v20 = vpop.f32.mrf.mxu0 }
  0xec   : > { %v887_v51 = vrot.slane %v883_v20, 1  ;;  %v888_v52 = vrot.slane %v883_v20, 2  ;;  %v889_v53 = vrot.slane %v883_v20, 3  ;;  %902 = vst.msk [vmem:[#allocation2] sm:$0x1] %vm901_vm10, %v883_v20  ;;  %v890_v54 = vrot.slane %v883_v20, 4 }
  0xed   : > { %v891_v55 = vrot.slane %v883_v20, 5  ;;  %v892_v56 = vrot.slane %v883_v20, 6  ;;  %v893_v57 = vrot.slane %v883_v20, 7 }
  0xee   : > { %903 = vst.msk [vmem:[#allocation2 + $0x1] sm:$0x1] %vm901_vm10, %v887_v51 }
  0xef   : > { %904 = vst.msk [vmem:[#allocation2 + $0x2] sm:$0x1] %vm901_vm10, %v888_v52 }
  0xf0   : > { %905 = vst.msk [vmem:[#allocation2 + $0x3] sm:$0x1] %vm901_vm10, %v889_v53 }
  0xf1   : > { %906 = vst.msk [vmem:[#allocation2 + $0x4] sm:$0x1] %vm901_vm10, %v890_v54 }
  0xf2   : > { %907 = vst.msk [vmem:[#allocation2 + $0x5] sm:$0x1] %vm901_vm10, %v891_v55 }
  0xf3   : > { %908 = vst.msk [vmem:[#allocation2 + $0x6] sm:$0x1] %vm901_vm10, %v892_v56  ;;  %v1032_v31 = vld [vmem:[#allocation2] sm:$0x1] }
  0xf4   : > { %909 = vst.msk [vmem:[#allocation2 + $0x7] sm:$0x1] %vm901_vm10, %v893_v57  ;;  %v1034_v11 = vadd.f32 %v1032_v31, %v2579_v58 }
  0xf5   : > { %v1049_v22 = vld [vmem:[#allocation2 + $0x1] sm:$0x1] }
  0xf6   : > { %v955_v60 = vpop.f32.mrf.mxu1  ;;  %v1035_v33 = vmax.f32 %v1034_v11, %v2584_v30  ;;  %v1052_v61 = vadd.f32 %v1049_v22, %v2579_v58  ;;  %v1068_v62 = vld [vmem:[#allocation2 + $0x2] sm:$0x1] }
  0xf7   : > { %v959_v63 = vrot.slane %v955_v60, 1  ;;  %v960_v0 = vrot.slane %v955_v60, 2  ;;  %v961_v1 = vrot.slane %v955_v60, 3  ;;  %973 = vst.msk [vmem:[#allocation3] sm:$0x1] %vm901_vm10, %v955_v60  ;;  %v962_v2 = vrot.slane %v955_v60, 4 }
  0xf8   : > { %v963_v4 = vrot.slane %v955_v60, 5  ;;  %v1036_v5 = vsub.f32 %v2590_v59, %v1035_v33  ;;  %v1087_v6 = vld [vmem:[#allocation2 + $0x3] sm:$0x1]  ;;  %v1039_v7 = vsub.f32 %v1034_v11, %v1035_v33  ;;  %v1053_v8 = vmax.f32 %v1052_v61, %v2584_v30  ;;  %v1106_v12 = vld [vmem:[#allocation2 + $0x4] sm:$0x1] }
  0xf9   : > { %974 = vst.msk [vmem:[#allocation3 + $0x1] sm:$0x1] %vm901_vm10, %v959_v63  ;;  %v1071_v9 = vadd.f32 %v1068_v62, %v2579_v58  ;;  %v1090_v10 = vadd.f32 %v1087_v6, %v2579_v58  ;;  %v1125_v13 = vld [vmem:[#allocation2 + $0x5] sm:$0x1]  ;;  %v964_v14 = vrot.slane %v955_v60, 6  ;;  %v965_v19 = vrot.slane %v955_v60, 7 }
  0xfa   : > { %975 = vst.msk [vmem:[#allocation3 + $0x2] sm:$0x1] %vm901_vm10, %v960_v0  ;;  %v1037_v27 = vmul.f32 1.442695, %v1036_v5  ;;  %v1109_v28 = vadd.f32 %v1106_v12, %v2579_v58  ;;  %v1040_v35 = vmul.f32 1.442695, %v1039_v7  ;;  %v1054_v34 = vsub.f32 %v2590_v59, %v1053_v8 }
  0xfb   : > { %976 = vst.msk [vmem:[#allocation3 + $0x3] sm:$0x1] %vm901_vm10, %v961_v1  ;;  %v1057_v36 = vsub.f32 %v1052_v61, %v1053_v8  ;;  %v1072_v47 = vmax.f32 %v1071_v9, %v2584_v30  ;;  %v1091_v37 = vmax.f32 %v1090_v10, %v2584_v30  ;;  %v1128_v38 = vadd.f32 %v1125_v13, %v2579_v58  ;;  %v1144_v16 = vld [vmem:[#allocation2 + $0x6] sm:$0x1]  ;;  %v1163_v17 = vld [vmem:[#allocation2 + $0x7] sm:$0x1] }
  0xfc   : > { %977 = vst.msk [vmem:[#allocation3 + $0x4] sm:$0x1] %vm901_vm10, %v962_v2  ;;  %1725 = vpow2.f32 %v1037_v27  ;;  %v1055_v40 = vmul.f32 1.442695, %v1054_v34  ;;  %v1110_v3 = vmax.f32 %v1109_v28, %v2584_v30  ;;  %v1147_v45 = vadd.f32 %v1144_v16, %v2579_v58 }
  0xfd   : > { %978 = vst.msk [vmem:[#allocation3 + $0x5] sm:$0x1] %vm901_vm10, %v963_v4  ;;  %1727 = vpow2.f32 %v1040_v35  ;;  %v1058_v15 = vmul.f32 1.442695, %v1057_v36  ;;  %v1073_v39 = vsub.f32 %v2590_v59, %v1072_v47  ;;  %v1076_v42 = vsub.f32 %v1071_v9, %v1072_v47 }
  0xfe   : > { %979 = vst.msk [vmem:[#allocation3 + $0x6] sm:$0x1] %vm901_vm10, %v964_v14  ;;  %1729 = vpow2.f32 %v1055_v40  ;;  %v1095_v26 = vsub.f32 %v1090_v10, %v1091_v37  ;;  %v1092_v44 = vsub.f32 %v2590_v59, %v1091_v37  ;;  %v1033_v21 = vld [vmem:[#allocation3] sm:$0x1]  ;;  %v1129_v23 = vmax.f32 %v1128_v38, %v2584_v30 }
  0xff   : > { %980 = vst.msk [vmem:[#allocation3 + $0x7] sm:$0x1] %vm901_vm10, %v965_v19  ;;  %1731 = vpow2.f32 %v1058_v15  ;;  %v1074_v43 = vmul.f32 1.442695, %v1073_v39  ;;  %v1077_v18 = vmul.f32 1.442695, %v1076_v42  ;;  %v1111_v24 = vsub.f32 %v2590_v59, %v1110_v3 }
 0x100   : > { %v1166_v29 = vadd.f32 %v1163_v17, %v2579_v58  ;;  %v1096_v32 = vmul.f32 1.442695, %v1095_v26  ;;  %v1114_v48 = vsub.f32 %v1109_v28, %v1110_v3  ;;  %v1093_v50 = vmul.f32 1.442695, %v1092_v44  ;;  %v1051_v53 = vld [vmem:[#allocation3 + $0x1] sm:$0x1] }
 0x101   : > { %1733 = vpow2.f32 %v1077_v18  ;;  %v1148_v20 = vmax.f32 %v1147_v45, %v2584_v30  ;;  %v1130_v54 = vsub.f32 %v2590_v59, %v1129_v23  ;;  %v1112_v57 = vmul.f32 1.442695, %v1111_v24  ;;  %v1070_v0 = vld [vmem:[#allocation3 + $0x2] sm:$0x1] }
 0x102   : > { %v1726_v41 = vpop.eup %1725  ;;  %1735 = vpow2.f32 %v1074_v43  ;;  %v1133_v31 = vsub.f32 %v1128_v38, %v1129_v23  ;;  %v1167_v58 = vmax.f32 %v1166_v29, %v2584_v30  ;;  %v1115_v22 = vmul.f32 1.442695, %v1114_v48  ;;  %v1089_v14 = vld [vmem:[#allocation3 + $0x3] sm:$0x1] }
 0x103   : > { %v1728_v25 = vpop.eup %1727  ;;  %v1042_v46 = vmul.f32 0.0, %v1726_v41  ;;  %1737 = vpow2.f32 %v1096_v32  ;;  %v1152_v61 = vsub.f32 %v1147_v45, %v1148_v20  ;;  %v1131_v1 = vmul.f32 1.442695, %v1130_v54  ;;  %v1108_v42 = vld [vmem:[#allocation3 + $0x4] sm:$0x1] }
 0x104   : > { %v1043_v49 = vmul.f32 %v1728_v25, %v1033_v21  ;;  %v1730_v51 = vpop.eup %1729  ;;  %1739 = vpow2.f32 %v1093_v50  ;;  %v1134_v5 = vmul.f32 1.442695, %v1133_v31  ;;  %v1171_v30 = vsub.f32 %v1166_v29, %v1167_v58  ;;  %v1127_v45 = vld [vmem:[#allocation3 + $0x5] sm:$0x1] }
 0x105   : > { %v1045_v52 = vadd.f32 %v1728_v25, %v1042_v46  ;;  %v1732_v55 = vpop.eup %1731  ;;  %1741 = vpow2.f32 %v1112_v57  ;;  %v1149_v9 = vsub.f32 %v2590_v59, %v1148_v20  ;;  %v1153_v10 = vmul.f32 1.442695, %v1152_v61  ;;  %v1146_v29 = vld [vmem:[#allocation3 + $0x6] sm:$0x1] }
 0x106   : > { %v1044_v56 = vadd.f32 %v1043_v49, %v1042_v46  ;;  %v1061_v33 = vmul.f32 %v1732_v55, %v1051_v53  ;;  %1743 = vpow2.f32 %v1115_v22  ;;  %v1168_v28 = vsub.f32 %v2590_v59, %v1167_v58 }
 0x107   : > { %1047 = vst.msk [vmem:[#allocation3] sm:$0x1] %vm901_vm10, %v1045_v52  ;;  %v1063_v11 = vmul.f32 %v1730_v51, %v1045_v52  ;;  %v1734_v62 = vpop.eup %1733  ;;  %1745 = vpow2.f32 %v1131_v1  ;;  %v1172_v35 = vmul.f32 1.442695, %v1171_v30  ;;  %v1150_v40 = vmul.f32 1.442695, %v1149_v9 }
 0x108   : > { %1046 = vst.msk [vmem:[#allocation2] sm:$0x1] %vm901_vm10, %v1044_v56  ;;  %v1060_v60 = vmul.f32 %v1730_v51, %v1044_v56  ;;  %v1736_v2 = vpop.eup %1735  ;;  %v1080_v8 = vmul.f32 %v1734_v62, %v1070_v0  ;;  %1747 = vpow2.f32 %v1134_v5  ;;  %v1169_v59 = vmul.f32 1.442695, %v1168_v28  ;;  %v1165_v56 = vld [vmem:[#allocation3 + $0x7] sm:$0x1] }
 0x109   : > { %v1064_v63 = vadd.f32 %v1732_v55, %v1063_v11  ;;  %v1738_v12 = vpop.eup %1737 }
 0x10a   : > { %v1062_v4 = vadd.f32 %v1061_v33, %v1060_v60  ;;  %v1740_v19 = vpop.eup %1739  ;;  %v1099_v38 = vmul.f32 %v1738_v12, %v1089_v14 }
 0x10b   : > { %1066 = vst.msk [vmem:[#allocation3 + $0x1] sm:$0x1] %vm901_vm10, %v1064_v63  ;;  %v1082_v6 = vmul.f32 %v1736_v2, %v1064_v63  ;;  %v1742_v47 = vpop.eup %1741 }
 0x10c   : > { %1065 = vst.msk [vmem:[#allocation2 + $0x1] sm:$0x1] %vm901_vm10, %v1062_v4  ;;  %v1079_v7 = vmul.f32 %v1736_v2, %v1062_v4  ;;  %v1744_v15 = vpop.eup %1743 }
 0x10d   : > { %v1083_v13 = vadd.f32 %v1734_v62, %v1082_v6  ;;  %v1746_v26 = vpop.eup %1745  ;;  %v1118_v44 = vmul.f32 %v1744_v15, %v1108_v42 }
 0x10e   : > { %v1081_v27 = vadd.f32 %v1080_v8, %v1079_v7  ;;  %v2628_v34 = vld [vmem:[#allocation3] sm:$0x1]  ;;  %v1748_v43 = vpop.eup %1747 }
 0x10f   : > { %1085 = vst.msk [vmem:[#allocation3 + $0x2] sm:$0x1] %vm901_vm10, %v1083_v13  ;;  %v1101_v36 = vmul.f32 %v1740_v19, %v1083_v13  ;;  %1749 = vrcp.f32 %v2628_v34  ;;  %v1206_v48 = vand.u32 2147483647, %v2628_v34  ;;  %v1208_v49 = vand.u32 2147483648, %v2628_v34 }
 0x110   : > { %1084 = vst.msk [vmem:[#allocation2 + $0x2] sm:$0x1] %vm901_vm10, %v1081_v27  ;;  %v1098_v37 = vmul.f32 %v1740_v19, %v1081_v27  ;;  %1751 = vpow2.f32 %v1153_v10  ;;  %v1137_v51 = vmul.f32 %v1748_v43, %v1127_v45  ;;  %vm1202_vm5 = vweird.f32 %v2628_v34 }
 0x111   : > { %v1102_v39 = vadd.f32 %v1738_v12, %v1101_v36  ;;  %1753 = vpow2.f32 %v1172_v35  ;;  %vm2661_vm12 = vcmp.eq.f32.partialorder %v1206_v48, 8.507059e+37  ;;  %v1209_v63 = vor.u32 1.1754944e-38, %v1208_v49 }
 0x112   : > { %v1100_v3 = vadd.f32 %v1099_v38, %v1098_v37  ;;  %v2633_v16 = vld [vmem:[#allocation3 + $0x1] sm:$0x1]  ;;  %v1343_v37 = vld [vmem:[#allocation13 + $0x18] sm:$0xff]  ;;  %v1342_v38 = vld [vmem:[#allocation13 + $0x10] sm:$0xff] }
 0x113   : > { %1104 = vst.msk [vmem:[#allocation3 + $0x3] sm:$0x1] %vm901_vm10, %v1102_v39  ;;  %v1120_v17 = vmul.f32 %v1742_v47, %v1102_v39  ;;  %1755 = vrcp.f32 %v2633_v16  ;;  %v1221_v57 = vand.u32 2147483647, %v2633_v16  ;;  %v1223_v31 = vand.u32 2147483648, %v2633_v16  ;;  %1386 = vmatpush.msra.mxu3 %v1343_v37 }
 0x114   : > { %1103 = vst.msk [vmem:[#allocation2 + $0x3] sm:$0x1] %vm901_vm10, %v1100_v3  ;;  %v1117_v18 = vmul.f32 %v1742_v47, %v1100_v3  ;;  %1757 = vpow2.f32 %v1150_v40  ;;  %vm1217_vm0 = vweird.f32 %v2633_v16 }
 0x115   : > { %v2638_v21 = vpop.eup %1749  ;;  %v1121_v23 = vadd.f32 %v1744_v15, %v1120_v17  ;;  %1759 = vpow2.f32 %v1169_v59  ;;  %vm2679_vm14 = vcmp.eq.f32.partialorder %v1221_v57, 8.507059e+37  ;;  %v1224_v9 = vor.u32 1.1754944e-38, %v1223_v31  ;;  %1387 = vmatpush.msra.mxu3 %v1342_v38  ;;  %v1182_v57 = vld [vmem:[#allocation2 + $0x1] sm:$0x1] }
 0x116   : > { %v1752_v41 = vpop.eup %1751  ;;  %v1119_v24 = vadd.f32 %v1118_v44, %v1117_v18  ;;  %v2640_v25 = vld [vmem:[#allocation3 + $0x2] sm:$0x1]  ;;  %v1198_v46 = vmul.f32 %v2638_v21, %v2628_v34  ;;  %vm1203_vm15 = vweird.f32 %v2638_v21  ;;  %v1181_v44 = vld [vmem:[#allocation2] sm:$0x1] }
 0x117   : > { %1123 = vst.msk [vmem:[#allocation3 + $0x4] sm:$0x1] %vm901_vm10, %v1121_v23  ;;  %v1139_v32 = vmul.f32 %v1746_v26, %v1121_v23  ;;  %1761 = vrcp.f32 %v2640_v25  ;;  %v1754_v50 = vpop.eup %1753  ;;  %v1156_v55 = vmul.f32 %v1752_v41, %v1146_v29  ;;  %vm2674_vm8 = vmor %vm1202_vm5, %vm1203_vm15  ;;  %vm1232_vm3 = vweird.f32 %v2640_v25  ;;  %v1341_v18 = vld [vmem:[#allocation13 + $0x8] sm:$0xff]  ;;  %v1340_v29 = vld [vmem:[#allocation13] sm:$0xff] }
 0x118   : > { %1122 = vst.msk [vmem:[#allocation2 + $0x4] sm:$0x1] %vm901_vm10, %v1119_v24  ;;  %v1136_v20 = vmul.f32 %v1746_v26, %v1119_v24  ;;  %v1199_v52 = vsub.f32 1.0, %v1198_v46  ;;  %v1175_v2 = vmul.f32 %v1754_v50, %v1165_v56  ;;  %v1236_v28 = vand.u32 2147483647, %v2640_v25  ;;  %1388 = vmatpush.msra.mxu3 %v1341_v18 }
 0x119   : > { %v2650_v53 = vpop.eup %1755  ;;  %v1140_v54 = vadd.f32 %v1748_v43, %v1139_v32  ;;  %v1238_v47 = vand.u32 2147483648, %v2640_v25 }
 0x11a   : > { %v1758_v58 = vpop.eup %1757  ;;  %v1138_v11 = vadd.f32 %v1137_v51, %v1136_v20  ;;  %v2654_v22 = vld [vmem:[#allocation3 + $0x3] sm:$0x1]  ;;  %v1200_v60 = vmul.f32 %v2638_v21, %v1199_v52  ;;  %v1213_v33 = vmul.f32 %v2650_v53, %v2633_v16  ;;  %vm1218_vm11 = vweird.f32 %v2650_v53  ;;  %1389 = vmatpush.msra.mxu3 %v1340_v29 }
 0x11b   : > { %1142 = vst.msk [vmem:[#allocation3 + $0x5] sm:$0x1] %vm901_vm10, %v1140_v54  ;;  %v1158_v61 = vmul.f32 %v1758_v58, %v1140_v54  ;;  %1763 = vrcp.f32 %v2654_v22  ;;  %v1760_v0 = vpop.eup %1759  ;;  %v1251_v42 = vand.u32 2147483647, %v2654_v22  ;;  %vm2710_vm2 = vmor %vm1217_vm0, %vm1218_vm11  ;;  %vm2722_vm4 = vcmp.eq.f32.partialorder %v1236_v28, 8.507059e+37 }
 0x11c   : > { %1141 = vst.msk [vmem:[#allocation2 + $0x5] sm:$0x1] %vm901_vm10, %v1138_v11  ;;  %v1155_v1 = vmul.f32 %v1758_v58, %v1138_v11  ;;  %v1201_v4 = vadd.f32 %v2638_v21, %v1200_v60  ;;  %v1214_v5 = vsub.f32 1.0, %v1213_v33  ;;  %v1253_v23 = vand.u32 2147483648, %v2654_v22  ;;  %v1184_v28 = vld [vmem:[#allocation2 + $0x3] sm:$0x1] }
 0x11d   : > { %v2668_v30 = vpop.eup %1761  ;;  %v1159_v6 = vadd.f32 %v1752_v41, %v1158_v61  ;;  %v1239_v41 = vor.u32 1.1754944e-38, %v1238_v47  ;;  %vm1247_vm7 = vweird.f32 %v2654_v22  ;;  %vm2741_vm9 = vcmp.eq.f32.partialorder %v1251_v42, 8.507059e+37 }
 0x11e   : > { %v1157_v10 = vadd.f32 %v1156_v55, %v1155_v1  ;;  %v2683_v12 = vld [vmem:[#allocation3 + $0x4] sm:$0x1]  ;;  %v1205_v13 = vsel %vm2674_vm8, %v2638_v21, %v1201_v4  ;;  %v1215_v14 = vmul.f32 %v2650_v53, %v1214_v5  ;;  %v1228_v19 = vmul.f32 %v2668_v30, %v2640_v25  ;;  %v2764_v33 = vpop.f32.mrf.mxu2 }
 0x11f   : > { %1161 = vst.msk [vmem:[#allocation3 + $0x6] sm:$0x1] %vm901_vm10, %v1159_v6  ;;  %v1177_v27 = vmul.f32 %v1760_v0, %v1159_v6  ;;  %v1210_v39 = vsel %vm2661_vm12, %v1209_v63, %v1205_v13  ;;  %1765 = vrcp.f32 %v2683_v12  ;;  %vm1233_vm1 = vweird.f32 %v2668_v30  ;;  %v1185_v26 = vld [vmem:[#allocation2 + $0x4] sm:$0x1] }
 0x120   : > { %1160 = vst.msk [vmem:[#allocation2 + $0x6] sm:$0x1] %vm901_vm10, %v1157_v10  ;;  %v1174_v35 = vmul.f32 %v1760_v0, %v1157_v10  ;;  %v1216_v34 = vadd.f32 %v2650_v53, %v1215_v14  ;;  %v1229_v36 = vsub.f32 1.0, %v1228_v19  ;;  %v2731_v46 = vmul.f32 %v1210_v39, %v1181_v44  ;;  %vm2737_vm13 = vmor %vm1232_vm3, %vm1233_vm1  ;;  %v1183_v0 = vld [vmem:[#allocation2 + $0x2] sm:$0x1] }
 0x121   : > { %v2698_v40 = vpop.eup %1763  ;;  %v1178_v15 = vadd.f32 %v1754_v50, %v1177_v27  ;;  %v1266_v49 = vand.u32 2147483647, %v2683_v12  ;;  %v1268_v50 = vand.u32 2147483648, %v2683_v12  ;;  %v1254_v54 = vor.u32 1.1754944e-38, %v1253_v23 }
 0x122   : > { %v1176_v3 = vadd.f32 %v1175_v2, %v1174_v35  ;;  %v2704_v59 = vld [vmem:[#allocation3 + $0x5] sm:$0x1]  ;;  %v1230_v17 = vmul.f32 %v2668_v30, %v1229_v36  ;;  %v1243_v43 = vmul.f32 %v2698_v40, %v2654_v22  ;;  %v1220_v21 = vsel %vm2710_vm2, %v2650_v53, %v1216_v34 }
 0x123   : > { %1180 = vst.msk [vmem:[#allocation3 + $0x7] sm:$0x1] %vm901_vm10, %v1178_v15  ;;  %1767 = vrcp.f32 %v2704_v59  ;;  %v1225_v51 = vsel %vm2679_vm14, %v1224_v9, %v1220_v21  ;;  %vm1248_vm6 = vweird.f32 %v2698_v40  ;;  %v1281_v55 = vand.u32 2147483647, %v2704_v59 }
 0x124   : > { %1179 = vst.msk [vmem:[#allocation2 + $0x7] sm:$0x1] %vm901_vm10, %v1176_v3  ;;  %v1231_v45 = vadd.f32 %v2668_v30, %v1230_v17  ;;  %v1244_v24 = vsub.f32 1.0, %v1243_v43  ;;  %v1283_v56 = vand.u32 2147483648, %v2704_v59  ;;  %vm1262_vm10 = vweird.f32 %v2683_v12  ;;  %vm1249_vm5 = vmor %vm1247_vm7, %vm1248_vm6 }
 0x125   : > { %v1766_v53 = vpop.eup %1765  ;;  %v1226_v61 = vmul.f32 %v1225_v51, %v1182_v57  ;;  %vm2770_vm15 = vcmp.eq.f32.partialorder %v1266_v49, 8.507059e+37  ;;  %v1269_v63 = vor.u32 1.1754944e-38, %v1268_v50  ;;  %vm1277_vm12 = vweird.f32 %v2704_v59 }
 0x126   : > { %v2747_v20 = vld [vmem:[#allocation3 + $0x6] sm:$0x1]  ;;  %v1235_v25 = vsel %vm2737_vm13, %v2668_v30, %v1231_v45  ;;  %v1245_v52 = vmul.f32 %v2698_v40, %v1244_v24  ;;  %v1258_v11 = vmul.f32 %v1766_v53, %v2683_v12  ;;  %v1318_v30 = vrot.slane %v2764_v33, 1  ;;  %v1186_v45 = vld [vmem:[#allocation2 + $0x5] sm:$0x1] }
 0x127   : > { %1769 = vrcp.f32 %v2747_v20  ;;  %v1240_v31 = vsel %vm2722_vm4, %v1239_v41, %v1235_v25  ;;  %vm2780_vm8 = vcmp.eq.f32.partialorder %v1281_v55, 8.507059e+37  ;;  %v1284_v7 = vor.u32 1.1754944e-38, %v1283_v56  ;;  %v1187_v55 = vld [vmem:[#allocation2 + $0x6] sm:$0x1] }
 0x128   : > { %v1246_v58 = vadd.f32 %v2698_v40, %v1245_v52  ;;  %v1259_v4 = vsub.f32 1.0, %v1258_v11  ;;  %v1241_v6 = vmul.f32 %v1240_v31, %v1183_v0  ;;  %vm1263_vm0 = vweird.f32 %v1766_v53 }
 0x129   : > { %v1768_v60 = vpop.eup %1767  ;;  %vm1292_vm14 = vweird.f32 %v2747_v20  ;;  %v1296_v14 = vand.u32 2147483647, %v2747_v20  ;;  %v1298_v19 = vand.u32 2147483648, %v2747_v20  ;;  %v1319_v27 = vrot.slane %v2764_v33, 2  ;;  %vm1264_vm3 = vmor %vm1262_vm10, %vm1263_vm0 }
 0x12a   : > { %v2775_v1 = vld [vmem:[#allocation3 + $0x7] sm:$0x1]  ;;  %v1250_v2 = vsel %vm1249_vm5, %v2698_v40, %v1246_v58  ;;  %v1273_v5 = vmul.f32 %v1768_v60, %v2704_v59  ;;  %v1260_v9 = vmul.f32 %v1766_v53, %v1259_v4  ;;  %vm1278_vm11 = vweird.f32 %v1768_v60 }
 0x12b   : > { %1771 = vrcp.f32 %v2775_v1  ;;  %v1255_v8 = vsel %vm2741_vm9, %v1254_v54, %v1250_v2  ;;  %v1320_v37 = vrot.slane %v2764_v33, 3  ;;  %v1321_v38 = vrot.slane %v2764_v33, 4  ;;  %vm1279_vm1 = vmor %vm1277_vm12, %vm1278_vm11 }
 0x12c   : > { %v1274_v10 = vsub.f32 1.0, %v1273_v5  ;;  %v1261_v35 = vadd.f32 %v1766_v53, %v1260_v9  ;;  %v1256_v47 = vmul.f32 %v1255_v8, %v1184_v28  ;;  %v1322_v42 = vrot.slane %v2764_v33, 5 }
 0x12d   : > { %v1770_v13 = vpop.eup %1769  ;;  %v1332_v12 = vmul.f32 %v2731_v46, %v2764_v33  ;;  %v1333_v43 = vmul.f32 %v1318_v30, %v1226_v61  ;;  %v1334_v18 = vmul.f32 %v1319_v27, %v1241_v6  ;;  %vm2806_vm4 = vcmp.eq.f32.partialorder %v1296_v14, 8.507059e+37  ;;  %v1188_v61 = vld [vmem:[#allocation2 + $0x7] sm:$0x1] }
 0x12e   : > { %v1275_v34 = vmul.f32 %v1768_v60, %v1274_v10  ;;  %v1288_v36 = vmul.f32 %v1770_v13, %v2747_v20  ;;  %vm1293_vm2 = vweird.f32 %v1770_v13  ;;  %v1265_v40 = vsel %vm1264_vm3, %v1766_v53, %v1261_v35 }
 0x12f   : > { %v1270_v17 = vsel %vm2770_vm15, %v1269_v63, %v1265_v40  ;;  %v1299_v59 = vor.u32 1.1754944e-38, %v1298_v19  ;;  %v1335_v29 = vmul.f32 %v1320_v37, %v1256_v47  ;;  %1356 = vst [vmem:[#allocation1] ss:$9 sm:$0xff] %v1332_v12  ;;  %vm1294_vm7 = vmor %vm1292_vm14, %vm1293_vm2  ;;  %v1311_v50 = vand.u32 2147483647, %v2775_v1 }
 0x130   : > { %v1276_v15 = vadd.f32 %v1768_v60, %v1275_v34  ;;  %v1289_v39 = vsub.f32 1.0, %v1288_v36  ;;  %v1271_v44 = vmul.f32 %v1270_v17, %v1185_v26  ;;  %1358 = vst [vmem:[#allocation1 + $0x1] ss:$9 sm:$0xff] %v1333_v43  ;;  %v1313_v51 = vand.u32 2147483648, %v2775_v1 }
 0x131   : > { %v1772_v3 = vpop.eup %1771  ;;  %v1323_v25 = vrot.slane %v2764_v33, 6  ;;  %1360 = vst [vmem:[#allocation1 + $0x2] ss:$9 sm:$0xff] %v1334_v18  ;;  %vm1307_vm9 = vweird.f32 %v2775_v1  ;;  %vm1312_vm10 = vcmp.eq.f32.partialorder %v1311_v50, 8.507059e+37  ;;  %v1324_v11 = vrot.slane %v2764_v33, 7 }
 0x132   : > { %v1280_v21 = vsel %vm1279_vm1, %v1768_v60, %v1276_v15  ;;  %v1290_v16 = vmul.f32 %v1770_v13, %v1289_v39  ;;  %v1303_v23 = vmul.f32 %v1772_v3, %v2775_v1  ;;  %v1336_v49 = vmul.f32 %v1321_v38, %v1271_v44  ;;  %1362 = vst [vmem:[#allocation1 + $0x3] ss:$9 sm:$0xff] %v1335_v29  ;;  %v1692_v1 = vld [vmem:[%s2870_s10] ss:$0 sm:$0xff] }
 0x133   : > { %v1285_v41 = vsel %vm2780_vm8, %v1284_v7, %v1280_v21  ;;  %vm1308_vm13 = vweird.f32 %v1772_v3  ;;  %v1314_v31 = vor.u32 1.1754944e-38, %v1313_v51  ;;  %vm2950_vm5 = vcmask 261120  }
 0x134   : > { %v1286_v32 = vmul.f32 %v1285_v41, %v1186_v45  ;;  %v1291_v46 = vadd.f32 %v1770_v13, %v1290_v16  ;;  %v1304_v48 = vsub.f32 1.0, %v1303_v23  ;;  %1364 = vst [vmem:[#allocation1 + $0x4] ss:$9 sm:$0xff] %v1336_v49  ;;  %vm1309_vm6 = vmor %vm1307_vm9, %vm1308_vm13 }
 0x135   : > { %vm2951_vm15 = vmmov %vm2950_vm5 }
 0x136   : > { %v1295_v52 = vsel %vm1294_vm7, %v1770_v13, %v1291_v46  ;;  %v1305_v53 = vmul.f32 %v1772_v3, %v1304_v48  ;;  %v1337_v54 = vmul.f32 %v1322_v42, %v1286_v32 }
 0x137   : > { %v1300_v56 = vsel %vm2806_vm4, %v1299_v59, %v1295_v52 }
 0x138   : > { %v1301_v57 = vmul.f32 %v1300_v56, %v1187_v55  ;;  %v1306_v20 = vadd.f32 %v1772_v3, %v1305_v53  ;;  %1366 = vst [vmem:[#allocation1 + $0x5] ss:$9 sm:$0xff] %v1337_v54 }
 0x13a   : > { %v1310_v58 = vsel %vm1309_vm6, %v1772_v3, %v1306_v20  ;;  %v1338_v60 = vmul.f32 %v1323_v25, %v1301_v57 }
 0x13b   : > { %v1315_v62 = vsel %vm1312_vm10, %v1314_v31, %v1310_v58 }
 0x13c   : > { %v1316_v63 = vmul.f32 %v1315_v62, %v1188_v61  ;;  %1368 = vst [vmem:[#allocation1 + $0x6] ss:$9 sm:$0xff] %v1338_v60 }
 0x13e   : > { %v1339_v0 = vmul.f32 %v1324_v11, %v1316_v63 }
 0x140   : > { %1370 = vst [vmem:[#allocation1 + $0x7] ss:$9 sm:$0xff] %v1339_v0 }
 0x147   : > { %v1371_v2 = vld [vmem:[#allocation1] sm:$0xff] }
 0x148   : > { %1583 = vmatmul.msk.f32.vlgmr.msra.gmra.mxu3 %vm2950_vm5, %v1371_v2 }
 0x1cb   : > { %v1391_v4 = vpop.f32.mrf.mxu3 }
 0x1cc   : > { %v1392_v5 = vadd.f32 %v1692_v1, %v1391_v4 }
 0x1ce   : > { %v1395_v30 = vrot.slane %v1392_v5, 1  ;;  %v1396_v6 = vrot.slane %v1392_v5, 2  ;;  %v1397_v33 = vrot.slane %v1392_v5, 3  ;;  %1402 = vst [vmem:[#allocation1] ss:$9 sm:$0xff] %v1392_v5  ;;  %v1398_v22 = vrot.slane %v1392_v5, 4 }
 0x1cf   : > { %v1399_v7 = vrot.slane %v1392_v5, 5  ;;  %v1400_v8 = vrot.slane %v1392_v5, 6  ;;  %v1401_v9 = vrot.slane %v1392_v5, 7 }
 0x1d0   : > { %1404 = vst [vmem:[#allocation1 + $0x1] ss:$9 sm:$0xff] %v1395_v30 }
 0x1d1   : > { %1406 = vst [vmem:[#allocation1 + $0x2] ss:$9 sm:$0xff] %v1396_v6 }
 0x1d2   : > { %1408 = vst [vmem:[#allocation1 + $0x3] ss:$9 sm:$0xff] %v1397_v33 }
 0x1d3   : > { %1410 = vst [vmem:[#allocation1 + $0x4] ss:$9 sm:$0xff] %v1398_v22 }
 0x1d4   : > { %1412 = vst [vmem:[#allocation1 + $0x5] ss:$9 sm:$0xff] %v1399_v7 }
 0x1d5   : > { %1414 = vst [vmem:[#allocation1 + $0x6] ss:$9 sm:$0xff] %v1400_v8 }
 0x1d6   : > { %1416 = vst [vmem:[#allocation1 + $0x7] ss:$9 sm:$0xff] %v1401_v9 }
 0x1dd   : > { %v1417_v10 = vld [vmem:[#allocation1] sm:$0xff] }
 0x1de   : > { %1419 = vst.msk [vmem:[%s484_s14] sm:$0xff] %vm2951_vm15, %v1417_v10 }
 0x1df   : > { %1980 = shalt.err (!%p1977_p9)
}
 0x1e0   : > { %1610 = dma.vmem_to_hbm [thread:$0]  (%p2188_p13), %s1434_s27, 128, %s1436_s16, %s1421_s7  }
 0x1e1 PF: > { %s1447_s26 = sand.u32 1, %s2019_s17   ;;  %p2952_p10 = scmp.ge.s32.totalorder %s2031_s20, 2 }
 0x1e2   : > { %s1448_s12 = scalar_lea.sflag [#allocation6], %s1447_s26 }
 0x1e3   : > { %p1633_p11 = pnand %p2952_p10, %p2193_p5 }
 0x1e5   : > { %p1634_p0 = pneg %p1633_p11 }
 0x1e7   : > { %2014 = dma.done.wait (%p1634_p0), %s1448_s12, 128  }
 0x1e8   : > { %2016 = vsyncadd (%p1634_p0), %s1448_s12, 4294967168  ;;  %p27_p2 = scmp.ge.s32.totalorder %s2168_s28, 4   ;;  %s2953_s17 = smov %s2023_s18 }
 0x1e9   : > { %s2954_s18 = smov %s2027_s19  ;;  %s2955_s19 = smov %s2180_s1 }
 0x1ea   : > { %s2956_s20 = smov %s2168_s28  ;;  %29 = sbr.rel (!%p27_p2) target bundleno = 14 (0xe), region = 157 }
 0x1ef   :  { %1454 = vsyncpa [#allocation5], 1 }
 0x1f0   :  { %1456 = vsyncpa [#allocation5 + $0x1], 1 }
 0x1f1   :  { %1457 = vsyncpa [#allocation8], 1 }
 0x1f2   :  { %1458 = vsyncpa [#allocation11], 1 }
 0x1f3   :  { %1459 = vsyncpa [#allocation14], 1 }
 0x1f4   :  { %1460 = vsyncpa [#allocation6], 1 }
 0x1f5   :  { %1462 = vsyncpa [#allocation6 + $0x1], 1 }

</bundles_post_ra>
